<compile_context>
chip_gen: v7x
topology: tpu7x:2x2x1
jax: 0.10.0
libtpu: 0.0.40
codegen_flags: <defaults>
</compile_context>

<pallas_src>
import functools

import jax
import jax.numpy as jnp
from jax import lax
from jax.experimental import pallas as pl
from jax.experimental.pallas import tpu as pltpu

_LANE = 128
_MIB = 1024 * 1024

_ACT_FNS = {
    "relu": lambda y: jnp.maximum(y, 0.0),
    "gelu": jax.nn.gelu,
    "tanh": jnp.tanh,
}
# TODO(synk): other ACT2FN entries (swish/silu variants, etc.) are not wired up.


def _round_up(x, m):
    return ((x + m - 1) // m) * m


def _cdiv(a, b):
    return -(-a // b)


def _vmem_budget():
    """Returns (usable budget, physical capacity) in bytes for this TPU."""
    cap = None
    try:
        info = pltpu.get_tpu_info()
        c = getattr(info, "vmem_capacity_bytes", None)
        if c:
            cap = int(c)
    except Exception:
        cap = None
    if cap is None:
        kind = ""
        try:
            kind = str(jax.devices()[0].device_kind).lower()
        except Exception:
            pass
        # v7x has 64 MiB per TensorCore; v5e / v6e have 128 MiB.
        cap = 64 * _MIB if "7" in kind else 128 * _MIB
    return int(cap * 0.75), cap


def _spec(shape, index_map, buffers=None, use_pm=True):
    """BlockSpec; optionally request `buffers`-deep pipelining (1 = resident)."""
    if use_pm and buffers is not None:
        try:
            return pl.BlockSpec(shape, index_map,
                                pipeline_mode=pl.Buffered(buffers))
        except Exception:
            pass
    return pl.BlockSpec(shape, index_map)


def _call_with_pm_fallback(build):
    """Run build(True); if pipeline_mode isn't supported, retry without it."""
    try:
        return build(True)
    except Exception:
        return build(False)


def _layer_norm_f32(y, g, b, n_valid, n_padded, eps):
    # Two-pass statistics in f32 (avoids E[x^2]-E[x]^2 cancellation).  The
    # feature dim may be zero-padded: padded lanes of y are exactly 0, so their
    # contribution to sum((y-mean)^2) is (n_padded-n_valid)*mean^2 and is
    # subtracted analytically; padded gamma/beta are 0, so padded lanes stay 0.
    inv_n = 1.0 / float(n_valid)
    mean = jnp.sum(y, axis=-1, keepdims=True) * inv_n
    d = y - mean
    ss = jnp.sum(d * d, axis=-1, keepdims=True)
    ss = ss - float(n_padded - n_valid) * (mean * mean)
    var = jnp.maximum(ss * inv_n, 0.0)
    return (d * lax.rsqrt(var + eps)) * g + b


# ---------------------------------------------------------------------------
# Fused whole-stack kernel: the row tile stays on-chip across all layers;
# weights / LN params are grid-invariant VMEM residents.
# ---------------------------------------------------------------------------
def _fused_projector_kernel(*refs, layer_cfg, eps, matmul_dtype):
    x_ref, o_ref, layer_refs = refs[0], refs[-1], refs[1:-1]
    num_layers = len(layer_cfg)
    h = x_ref[...]                      # already in the matmul dtype (host cast)
    for idx, (do_norm, act_name, n_valid, n_padded) in enumerate(layer_cfg):
        w = layer_refs[3 * idx][...]
        y = jnp.dot(h, w, preferred_element_type=jnp.float32)   # MXU, f32 acc
        if do_norm:
            y = _layer_norm_f32(y, layer_refs[3 * idx + 1][...],
                                layer_refs[3 * idx + 2][...],
                                n_valid, n_padded, eps)
        if act_name is not None:
            y = _ACT_FNS[act_name](y)
        if idx + 1 < num_layers:
            # Keep the inter-layer activation in the matmul dtype: halves the
            # live VMEM/vreg footprint; numerically identical to casting at the
            # next matmul.
            h = y.astype(matmul_dtype)
        else:
            o_ref[...] = y.astype(o_ref.dtype)


def _projector_fused_call(x_pad, padded_params, layer_cfg, *, tm, eps,
                          out_dtype, matmul_dtype, vmem_limit, cost):
    M_pad, K0_pad = x_pad.shape
    N_pad = padded_params[-1][0].shape[1]

    def build(use_pm):
        in_specs = [pl.BlockSpec((tm, K0_pad), lambda i: (i, 0))]
        args = [x_pad]
        for (w, g, b) in padded_params:
            kp, npad = w.shape
            # Grid-invariant residents: single-buffered (double-buffering a
            # block whose index never changes buys nothing, halves VMEM cost).
            in_specs.append(_spec((kp, npad), lambda i: (0, 0), 1, use_pm))
            in_specs.append(_spec((1, npad), lambda i: (0, 0), 1, use_pm))
            in_specs.append(_spec((1, npad), lambda i: (0, 0), 1, use_pm))
            args.extend((w, g, b))

        kernel = functools.partial(_fused_projector_kernel,
                                   layer_cfg=tuple(layer_cfg), eps=eps,
                                   matmul_dtype=matmul_dtype)
        return pl.pallas_call(
            kernel,
            out_shape=jax.ShapeDtypeStruct((M_pad, N_pad), out_dtype),
            grid_spec=pltpu.PrefetchScalarGridSpec(
                num_scalar_prefetch=0,
                grid=(M_pad // tm,),
                in_specs=in_specs,
                out_specs=pl.BlockSpec((tm, N_pad), lambda i: (i, 0)),
            ),
            compiler_params=pltpu.CompilerParams(
                dimension_semantics=("parallel",),
                vmem_limit_bytes=vmem_limit,
            ),
            cost_estimate=cost,
        )(*args)

    return _call_with_pm_fallback(build)


# ---------------------------------------------------------------------------
# Per-layer fallback kernel: K-tiled (and N-tiled when no LayerNorm) matmul
# with f32 accumulator and a pl.when epilogue for LayerNorm / activation.
# ---------------------------------------------------------------------------
def _layer_kernel(x_ref, w_ref, g_ref, b_ref, o_ref, acc_ref, *,
                  do_norm, act_name, n_valid, n_padded, eps):
    k = pl.program_id(2)

    @pl.when(k == 0)
    def _():
        acc_ref[...] = jnp.zeros_like(acc_ref)

    acc_ref[...] += jnp.dot(x_ref[...], w_ref[...],
                            preferred_element_type=jnp.float32)

    @pl.when(k == pl.num_programs(2) - 1)
    def _():
        y = acc_ref[...]
        if do_norm:
            y = _layer_norm_f32(y, g_ref[...], b_ref[...], n_valid, n_padded, eps)
        if act_name is not None:
            y = _ACT_FNS[act_name](y)
        o_ref[...] = y.astype(o_ref.dtype)


def _projection_layer_call(x_pad, w, g, b, *, do_norm, act_name, n_valid,
                           n_padded, eps, tm, tk, tn, out_dtype, vmem_limit,
                           weight_buffers):
    M_pad, K_pad = x_pad.shape
    _, N_pad = w.shape
    kernel = functools.partial(_layer_kernel, do_norm=do_norm,
                               act_name=act_name, n_valid=n_valid,
                               n_padded=n_padded, eps=eps)
    cost = pl.CostEstimate(
        flops=2 * M_pad * K_pad * N_pad,
        transcendentals=M_pad if do_norm else 0,
        bytes_accessed=((M_pad // tm) * K_pad * N_pad * w.dtype.itemsize
                        + (N_pad // tn) * M_pad * K_pad * x_pad.dtype.itemsize
                        + (g.size + b.size) * 4
                        + M_pad * N_pad * jnp.dtype(out_dtype).itemsize),
    )

    def build(use_pm):
        return pl.pallas_call(
            kernel,
            out_shape=jax.ShapeDtypeStruct((M_pad, N_pad), out_dtype),
            grid_spec=pltpu.PrefetchScalarGridSpec(
                num_scalar_prefetch=0,
                grid=(M_pad // tm, N_pad // tn, K_pad // tk),
                in_specs=[
                    pl.BlockSpec((tm, tk), lambda i, n, k: (i, k)),
                    _spec((tk, tn), lambda i, n, k: (k, n),
                          weight_buffers, use_pm),
                    pl.BlockSpec((1, tn), lambda i, n, k: (0, n)),
                    pl.BlockSpec((1, tn), lambda i, n, k: (0, n)),
                ],
                out_specs=pl.BlockSpec((tm, tn), lambda i, n, k: (i, n)),
                scratch_shapes=[pltpu.VMEM((tm, tn), jnp.float32)],
            ),
            compiler_params=pltpu.CompilerParams(
                dimension_semantics=("parallel", "arbitrary", "arbitrary"),
                vmem_limit_bytes=vmem_limit,
            ),
            cost_estimate=cost,
        )(x_pad, w, g, b)

    return _call_with_pm_fallback(build)


def _choose_layer_tiles(K_pad, N_pad, tm, wbytes, xbytes, obytes, budget,
                        allow_n_tiling, n_wbuf, tk_hint):
    """Pick (tk, tn) lane-multiple divisors that keep the layer in VMEM budget."""
    def footprint(tk_c, tn_c):
        return (n_wbuf * tk_c * tn_c * wbytes      # weight stream buffers
                + 2 * tm * tk_c * xbytes           # x tile (double buffered)
                + 2 * tm * tn_c * obytes           # out tile (double buffered)
                + tm * tn_c * 4                    # f32 accumulator scratch
                + 8 * tn_c * 4                     # gamma/beta buffers
                + 2 * _MIB)                        # compiler scratch slack

    tn_candidates = [N_pad]
    if allow_n_tiling:
        tn_candidates = [d for d in range(N_pad, 0, -_LANE) if N_pad % d == 0]
    tk_candidates = [d for d in range(K_pad, 0, -_LANE) if K_pad % d == 0]

    for tn_c in tn_candidates:
        if tk_hint is not None:
            t = min(int(tk_hint), K_pad)
            if t % _LANE == 0 and K_pad % t == 0 and footprint(t, tn_c) <= budget:
                return t, tn_c
        for tk_c in tk_candidates:          # descending: prefer big K tiles
            if footprint(tk_c, tn_c) <= budget:
                return tk_c, tn_c
    # Best effort if nothing nominally fits.
    return _LANE, (N_pad if not allow_n_tiling else _LANE)


# ---------------------------------------------------------------------------
# Host-side param construction / preparation
# ---------------------------------------------------------------------------
def make_projector_params(key, num_layers, input_size, output_size):
    """Matches Projector._init_weights: proj.weight ~ N(0, in^(-1/2)),
    LN weight = 1, LN bias = 0.  Linear weight stored transposed (in, out)."""
    params = []
    for layer in range(num_layers):
        in_sz = input_size if layer == 0 else output_size
        key, sub = jax.random.split(key)
        w_t = (jax.random.normal(sub, (in_sz, output_size), jnp.float32)
               * (in_sz ** -0.5))
        params.append((w_t, jnp.ones((output_size,), jnp.float32),
                       jnp.zeros((output_size,), jnp.float32)))
    return params


def prepare_projector_params(params, matmul_dtype=jnp.bfloat16):
    """One-time prep: pad feature dims to lane multiples (128) and cast weights
    to the matmul dtype.  Do this once and pass the result as
    `prepared_params=` so the padding/casting is not redone every forward."""
    md = jnp.dtype(matmul_dtype)
    prepared = []
    for (w_t, gamma, beta) in params:
        k_in, n_out = w_t.shape
        kp, npad = _round_up(k_in, _LANE), _round_up(n_out, _LANE)
        w_p = jnp.zeros((kp, npad), md).at[:k_in, :n_out].set(w_t.astype(md))
        g_p = jnp.zeros((1, npad), jnp.float32).at[0, :n_out].set(
            jnp.reshape(gamma, (-1,)).astype(jnp.float32))
        b_p = jnp.zeros((1, npad), jnp.float32).at[0, :n_out].set(
            jnp.reshape(beta, (-1,)).astype(jnp.float32))
        prepared.append((w_p, g_p, b_p))
    return tuple(prepared)


# ---------------------------------------------------------------------------
# Forward wrapper
# ---------------------------------------------------------------------------
def projector_forward(x, params, *, activation="relu", do_layer_norm=True,
                      layer_norm_in_last_layer=False, eps=1e-5, tm=None,
                      matmul_dtype=jnp.bfloat16, tk=None,
                      force_per_layer=False, prepared_params=None):
    """Forward pass of `Projector`.

    x:      (..., input_size); leading dims are flattened into rows.
    params: list of (w_t, gamma, beta); w_t is the torch weight transposed,
            shape (in_size, out_size); gamma/beta are 1-D (out_size,).
    """
    orig_shape = x.shape
    x2 = x.reshape(-1, orig_shape[-1])
    M, K0 = x2.shape
    num_layers = len(params)
    out_dtype = x2.dtype
    stream_dtype = jnp.dtype(matmul_dtype)

    # Static per-layer config: (do_norm, activation, valid N, padded N).
    layer_cfg = []
    for idx, (w_t, _g, _b) in enumerate(params):
        last = idx == num_layers - 1
        do_norm = bool(layer_norm_in_last_layer if last else do_layer_norm)
        act_name = None if (last or activation is None) else activation
        if act_name is not None and act_name not in _ACT_FNS:
            raise NotImplementedError(f"activation {act_name!r} not supported")
        n_out = int(w_t.shape[1])
        layer_cfg.append((do_norm, act_name, n_out, _round_up(n_out, _LANE)))

    # Weight padding/casting is hoisted out of the hot path; rebuild only if
    # the caller did not supply a matching prepared set.
    if (prepared_params is None or len(prepared_params) != num_layers
            or jnp.dtype(prepared_params[0][0].dtype) != stream_dtype):
        prepared_params = prepare_projector_params(params, matmul_dtype)

    K0_pad = prepared_params[0][0].shape[0]
    N_out = int(params[-1][0].shape[1])
    N_out_pad = prepared_params[-1][0].shape[1]

    # ---- Row tiling --------------------------------------------------------
    # * bf16 activations need sublane tiles of 16, f32 of 8.
    # * Narrow outputs (<=128 lanes) get a larger default tm so each weight
    #   push into the MXU is amortized over more rows.
    # * >=2 row tiles when M allows (v7x 2-TensorCore sharding via "parallel"),
    #   and M is split evenly across tiles to minimize padding waste.
    sub = 16 if stream_dtype.itemsize == 2 else 8
    if tm is None:
        tm = 512 if N_out_pad <= _LANE else 256
    tm = max(int(tm), sub)
    min_tiles = 2 if M >= 2 * sub else 1
    n_row_tiles = max(_cdiv(M, tm), min_tiles)
    tm_eff = _round_up(_cdiv(M, n_row_tiles), sub)
    M_pad = _round_up(M, tm_eff)

    # Stream x in the matmul dtype: halves x DMA bytes + VMEM buffers and drops
    # the in-kernel f32->bf16 cast for layer 0 (same values reach the MXU).
    x_pad = jnp.zeros((M_pad, K0_pad), stream_dtype).at[:M, :K0].set(
        x2.astype(stream_dtype))

    budget, capacity = _vmem_budget()
    wbytes = stream_dtype.itemsize
    obytes = jnp.dtype(out_dtype).itemsize

    # ---- Fused whole-stack path (preferred) --------------------------------
    weight_bytes = sum(w.size * wbytes for (w, _, _) in prepared_params)   # 1-buffered
    gb_bytes = sum((g.size + b.size) * 4 for (_, g, b) in prepared_params)  # 1-buffered
    live_act = max(tm_eff * (w.shape[0] * wbytes + w.shape[1] * 4)
                   for (w, _, _) in prepared_params)   # worst-layer in+out live tiles
    fused_footprint = (weight_bytes + gb_bytes
                       + 2 * tm_eff * K0_pad * wbytes     # x tile, double buffered
                       + 2 * tm_eff * N_out_pad * obytes  # out tile, double buffered
                       + live_act
                       + 2 * _MIB)                        # compiler scratch slack

    if not force_per_layer and fused_footprint <= budget:
        vmem_limit = int(min(max(fused_footprint + 4 * _MIB, 32 * _MIB),
                             int(capacity * 0.9)))
        cost = pl.CostEstimate(
            flops=2 * M_pad * sum(w.shape[0] * w.shape[1]
                                  for (w, _, _) in prepared_params),
            transcendentals=M_pad * sum(1 for c in layer_cfg if c[0]),
            bytes_accessed=(x_pad.size * wbytes + weight_bytes + gb_bytes
                            + M_pad * N_out_pad * obytes),
        )
        out = _projector_fused_call(
            x_pad, prepared_params, layer_cfg, tm=tm_eff, eps=eps,
            out_dtype=out_dtype, matmul_dtype=stream_dtype,
            vmem_limit=vmem_limit, cost=cost)
    else:
        # ---- Per-layer fallback (weight stack does not fit in VMEM) --------
        # Intermediate activations stay in the matmul dtype (halves the HBM
        # round trip); deeper weight-stream pipelining when there are only a
        # couple of row tiles (weight-BW bound regime).
        n_wbuf = 3 if (M_pad // tm_eff) <= 2 else 2
        h = x_pad
        for idx, ((w_p, g_p, b_p), cfg) in enumerate(zip(prepared_params,
                                                         layer_cfg)):
            do_norm, act_name, n_valid, n_padded = cfg
            K_pad, N_pad = w_p.shape
            last = idx == num_layers - 1
            layer_out_dtype = out_dtype if last else stream_dtype
            lobytes = jnp.dtype(layer_out_dtype).itemsize
            tk_l, tn_l = _choose_layer_tiles(
                K_pad, N_pad, tm_eff, wbytes, h.dtype.itemsize, lobytes,
                budget, allow_n_tiling=not do_norm, n_wbuf=n_wbuf, tk_hint=tk)
            layer_fp = (n_wbuf * tk_l * tn_l * wbytes
                        + 2 * tm_eff * tk_l * h.dtype.itemsize
                        + 2 * tm_eff * tn_l * lobytes
                        + tm_eff * tn_l * 4 + 8 * tn_l * 4)
            vmem_limit = int(min(max(layer_fp + 4 * _MIB, 32 * _MIB),
                                 int(capacity * 0.9)))
            h = _projection_layer_call(
                h, w_p, g_p, b_p, do_norm=do_norm, act_name=act_name,
                n_valid=n_valid, n_padded=n_padded, eps=eps, tm=tm_eff,
                tk=tk_l, tn=tn_l, out_dtype=layer_out_dtype,
                vmem_limit=vmem_limit, weight_buffers=n_wbuf)
        out = h

    out = out[:M, :N_out].astype(out_dtype)
    return out.reshape(orig_shape[:-1] + (N_out,))


def _reference_forward(x, params, *, activation="relu", do_layer_norm=True,
                       layer_norm_in_last_layer=False, eps=1e-5):
    num_layers = len(params)
    h = x
    for idx, (w_t, gamma, beta) in enumerate(params):
        last = idx == num_layers - 1
        h = h @ w_t
        if (layer_norm_in_last_layer if last else do_layer_norm):
            mean = jnp.mean(h, axis=-1, keepdims=True)
            var = jnp.mean((h - mean) ** 2, axis=-1, keepdims=True)
            h = (h - mean) * lax.rsqrt(var + eps) * gamma + beta
        if (not last) and activation is not None:
            h = _ACT_FNS[activation](h)
    return h


if __name__ == "__main__":
    num_layers, input_size, output_size = 3, 32, 64
    M = 16

    key = jax.random.PRNGKey(0)
    key, xk = jax.random.split(key)
    x = jax.random.normal(xk, (M, input_size), jnp.float32)
    params = make_projector_params(key, num_layers, input_size, output_size)
    ref = _reference_forward(x, params)

    # 1) Fully fused stack, f32 matmul inputs: exact path, tight tolerance.
    prep_f32 = prepare_projector_params(params, jnp.float32)
    out_f32 = jax.block_until_ready(
        projector_forward(x, params, matmul_dtype=jnp.float32,
                          prepared_params=prep_f32))
    assert out_f32.shape == (M, output_size)
    assert jnp.allclose(out_f32, ref, atol=1e-3, rtol=1e-3), "f32 fused mismatch"

    # 2) Fully fused stack, default bf16 matmul inputs (f32 accumulation/LN):
    #    the recommended MXU fast path; bf16-appropriate tolerance.
    prep_bf16 = prepare_projector_params(params, jnp.bfloat16)
    out_bf16 = jax.block_until_ready(
        projector_forward(x, params, prepared_params=prep_bf16))
    assert out_bf16.shape == (M, output_size)
    assert jnp.allclose(out_bf16, ref, atol=1e-1, rtol=1e-1), "bf16 fused mismatch"

    # 3) Per-layer fallback (taken when weights don't fit VMEM, e.g. v7x),
    #    forced here with a ragged feature size so layer 0 runs 2 K-steps.
    key, xk2 = jax.random.split(key)
    input_size2 = 200  # pads to 256 -> two K tiles of 128
    x2 = jax.random.normal(xk2, (M, input_size2), jnp.float32)
    params2 = make_projector_params(key, num_layers, input_size2, output_size)
    prep2 = prepare_projector_params(params2, jnp.float32)
    out_pl = jax.block_until_ready(
        projector_forward(x2, params2, matmul_dtype=jnp.float32,
                          prepared_params=prep2, force_per_layer=True, tk=128))
    ref2 = _reference_forward(x2, params2)
    assert out_pl.shape == (M, output_size)
    assert jnp.allclose(out_pl, ref2, atol=1e-3, rtol=1e-3), "per-layer mismatch"

    print("KERNEL_OK")
</pallas_src>

<mosaic_0001>
module attributes {stable_mosaic.version = 11 : i64} {
  func.func @_fused_projector_kernel(%arg0: i32, %arg1: memref<8x128xf32, #tpu.memory_space<vmem>>, %arg2: memref<128x128xf32, #tpu.memory_space<vmem>>, %arg3: memref<1x128xf32, #tpu.memory_space<vmem>>, %arg4: memref<1x128xf32, #tpu.memory_space<vmem>>, %arg5: memref<128x128xf32, #tpu.memory_space<vmem>>, %arg6: memref<1x128xf32, #tpu.memory_space<vmem>>, %arg7: memref<1x128xf32, #tpu.memory_space<vmem>>, %arg8: memref<128x128xf32, #tpu.memory_space<vmem>>, %arg9: memref<1x128xf32, #tpu.memory_space<vmem>>, %arg10: memref<1x128xf32, #tpu.memory_space<vmem>>, %arg11: memref<8x128xf32, #tpu.memory_space<vmem>>) attributes {dimension_semantics = [#tpu.dimension_semantics<parallel>], iteration_bounds = array<i64: 2>, scalar_prefetch = 0 : i64, scratch_operands = 0 : i64, tpu.core_type = #tpu.core_type<tc>, window_params = [{transform_indices = @transform_0, window_bounds = array<i64: 8, 128>}, {pipeline_mode = #tpu.pipeline_mode<synchronous>, transform_indices = @transform_1, window_bounds = array<i64: 128, 128>}, {pipeline_mode = #tpu.pipeline_mode<synchronous>, transform_indices = @transform_2, window_bounds = array<i64: 1, 128>}, {pipeline_mode = #tpu.pipeline_mode<synchronous>, transform_indices = @transform_3, window_bounds = array<i64: 1, 128>}, {pipeline_mode = #tpu.pipeline_mode<synchronous>, transform_indices = @transform_4, window_bounds = array<i64: 128, 128>}, {pipeline_mode = #tpu.pipeline_mode<synchronous>, transform_indices = @transform_5, window_bounds = array<i64: 1, 128>}, {pipeline_mode = #tpu.pipeline_mode<synchronous>, transform_indices = @transform_6, window_bounds = array<i64: 1, 128>}, {pipeline_mode = #tpu.pipeline_mode<synchronous>, transform_indices = @transform_7, window_bounds = array<i64: 128, 128>}, {pipeline_mode = #tpu.pipeline_mode<synchronous>, transform_indices = @transform_8, window_bounds = array<i64: 1, 128>}, {pipeline_mode = #tpu.pipeline_mode<synchronous>, transform_indices = @transform_9, window_bounds = array<i64: 1, 128>}, {transform_indices = @transform_10, window_bounds = array<i64: 8, 128>}]} {
    %c0 = arith.constant 0 : index
    %c0_0 = arith.constant 0 : index
    %0 = vector.load %arg1[%c0, %c0_0] : memref<8x128xf32, #tpu.memory_space<vmem>>, vector<8x128xf32>
    %c0_1 = arith.constant 0 : index
    %c0_2 = arith.constant 0 : index
    %1 = vector.load %arg2[%c0_1, %c0_2] : memref<128x128xf32, #tpu.memory_space<vmem>>, vector<128x128xf32>
    %cst = arith.constant dense<0.000000e+00> : vector<8x128xf32>
    %2 = tpu.matmul %0, %1, %cst {dimension_numbers = #tpu.dot_dimension_numbers<[1], [0], [0], [1], [0, 0, 1, 1], [], []>} : vector<8x128xf32>, vector<128x128xf32>, vector<8x128xf32> -> vector<8x128xf32>
    %c0_3 = arith.constant 0 : index
    %c0_4 = arith.constant 0 : index
    %3 = vector.load %arg3[%c0_3, %c0_4] : memref<1x128xf32, #tpu.memory_space<vmem>>, vector<1x128xf32>
    %c0_5 = arith.constant 0 : index
    %c0_6 = arith.constant 0 : index
    %4 = vector.load %arg4[%c0_5, %c0_6] : memref<1x128xf32, #tpu.memory_space<vmem>>, vector<1x128xf32>
    %cst_7 = arith.constant dense<0.000000e+00> : vector<8xf32>
    %5 = vector.multi_reduction <add>, %2, %cst_7 [1] : vector<8x128xf32> to vector<8xf32>
    %6 = vector.shape_cast %5 : vector<8xf32> to vector<8x1xf32>
    %cst_8 = arith.constant 1.562500e-02 : f32
    %7 = vector.broadcast %cst_8 : f32 to vector<8x1xf32>
    %8 = arith.mulf %6, %7 : vector<8x1xf32>
    %9 = vector.broadcast %8 : vector<8x1xf32> to vector<8x128xf32>
    %10 = arith.subf %2, %9 : vector<8x128xf32>
    %11 = arith.mulf %10, %10 : vector<8x128xf32>
    %cst_9 = arith.constant dense<0.000000e+00> : vector<8xf32>
    %12 = vector.multi_reduction <add>, %11, %cst_9 [1] : vector<8x128xf32> to vector<8xf32>
    %13 = vector.shape_cast %12 : vector<8xf32> to vector<8x1xf32>
    %14 = arith.mulf %8, %8 : vector<8x1xf32>
    %cst_10 = arith.constant 6.400000e+01 : f32
    %15 = vector.broadcast %cst_10 : f32 to vector<8x1xf32>
    %16 = arith.mulf %15, %14 : vector<8x1xf32>
    %17 = arith.subf %13, %16 : vector<8x1xf32>
    %cst_11 = arith.constant 1.562500e-02 : f32
    %18 = vector.broadcast %cst_11 : f32 to vector<8x1xf32>
    %19 = arith.mulf %17, %18 : vector<8x1xf32>
    %cst_12 = arith.constant 0.000000e+00 : f32
    %20 = vector.broadcast %cst_12 : f32 to vector<8x1xf32>
    %21 = arith.maximumf %19, %20 : vector<8x1xf32>
    %cst_13 = arith.constant 9.99999974E-6 : f32
    %22 = vector.broadcast %cst_13 : f32 to vector<8x1xf32>
    %23 = arith.addf %21, %22 : vector<8x1xf32>
    %24 = math.rsqrt %23 : vector<8x1xf32>
    %25 = vector.broadcast %24 : vector<8x1xf32> to vector<8x128xf32>
    %26 = arith.mulf %10, %25 : vector<8x128xf32>
    %27 = vector.broadcast %3 : vector<1x128xf32> to vector<8x128xf32>
    %28 = arith.mulf %26, %27 : vector<8x128xf32>
    %29 = vector.broadcast %4 : vector<1x128xf32> to vector<8x128xf32>
    %30 = arith.addf %28, %29 : vector<8x128xf32>
    %cst_14 = arith.constant 0.000000e+00 : f32
    %31 = vector.broadcast %cst_14 : f32 to vector<8x128xf32>
    %32 = arith.maximumf %30, %31 : vector<8x128xf32>
    %c0_15 = arith.constant 0 : index
    %c0_16 = arith.constant 0 : index
    %33 = vector.load %arg5[%c0_15, %c0_16] : memref<128x128xf32, #tpu.memory_space<vmem>>, vector<128x128xf32>
    %cst_17 = arith.constant dense<0.000000e+00> : vector<8x128xf32>
    %34 = tpu.matmul %32, %33, %cst_17 {dimension_numbers = #tpu.dot_dimension_numbers<[1], [0], [0], [1], [0, 0, 1, 1], [], []>} : vector<8x128xf32>, vector<128x128xf32>, vector<8x128xf32> -> vector<8x128xf32>
    %c0_18 = arith.constant 0 : index
    %c0_19 = arith.constant 0 : index
    %35 = vector.load %arg6[%c0_18, %c0_19] : memref<1x128xf32, #tpu.memory_space<vmem>>, vector<1x128xf32>
    %c0_20 = arith.constant 0 : index
    %c0_21 = arith.constant 0 : index
    %36 = vector.load %arg7[%c0_20, %c0_21] : memref<1x128xf32, #tpu.memory_space<vmem>>, vector<1x128xf32>
    %cst_22 = arith.constant dense<0.000000e+00> : vector<8xf32>
    %37 = vector.multi_reduction <add>, %34, %cst_22 [1] : vector<8x128xf32> to vector<8xf32>
    %38 = vector.shape_cast %37 : vector<8xf32> to vector<8x1xf32>
    %cst_23 = arith.constant 1.562500e-02 : f32
    %39 = vector.broadcast %cst_23 : f32 to vector<8x1xf32>
    %40 = arith.mulf %38, %39 : vector<8x1xf32>
    %41 = vector.broadcast %40 : vector<8x1xf32> to vector<8x128xf32>
    %42 = arith.subf %34, %41 : vector<8x128xf32>
    %43 = arith.mulf %42, %42 : vector<8x128xf32>
    %cst_24 = arith.constant dense<0.000000e+00> : vector<8xf32>
    %44 = vector.multi_reduction <add>, %43, %cst_24 [1] : vector<8x128xf32> to vector<8xf32>
    %45 = vector.shape_cast %44 : vector<8xf32> to vector<8x1xf32>
    %46 = arith.mulf %40, %40 : vector<8x1xf32>
    %cst_25 = arith.constant 6.400000e+01 : f32
    %47 = vector.broadcast %cst_25 : f32 to vector<8x1xf32>
    %48 = arith.mulf %47, %46 : vector<8x1xf32>
    %49 = arith.subf %45, %48 : vector<8x1xf32>
    %cst_26 = arith.constant 1.562500e-02 : f32
    %50 = vector.broadcast %cst_26 : f32 to vector<8x1xf32>
    %51 = arith.mulf %49, %50 : vector<8x1xf32>
    %cst_27 = arith.constant 0.000000e+00 : f32
    %52 = vector.broadcast %cst_27 : f32 to vector<8x1xf32>
    %53 = arith.maximumf %51, %52 : vector<8x1xf32>
    %cst_28 = arith.constant 9.99999974E-6 : f32
    %54 = vector.broadcast %cst_28 : f32 to vector<8x1xf32>
    %55 = arith.addf %53, %54 : vector<8x1xf32>
    %56 = math.rsqrt %55 : vector<8x1xf32>
    %57 = vector.broadcast %56 : vector<8x1xf32> to vector<8x128xf32>
    %58 = arith.mulf %42, %57 : vector<8x128xf32>
    %59 = vector.broadcast %35 : vector<1x128xf32> to vector<8x128xf32>
    %60 = arith.mulf %58, %59 : vector<8x128xf32>
    %61 = vector.broadcast %36 : vector<1x128xf32> to vector<8x128xf32>
    %62 = arith.addf %60, %61 : vector<8x128xf32>
    %cst_29 = arith.constant 0.000000e+00 : f32
    %63 = vector.broadcast %cst_29 : f32 to vector<8x128xf32>
    %64 = arith.maximumf %62, %63 : vector<8x128xf32>
    %c0_30 = arith.constant 0 : index
    %c0_31 = arith.constant 0 : index
    %65 = vector.load %arg8[%c0_30, %c0_31] : memref<128x128xf32, #tpu.memory_space<vmem>>, vector<128x128xf32>
    %cst_32 = arith.constant dense<0.000000e+00> : vector<8x128xf32>
    %66 = tpu.matmul %64, %65, %cst_32 {dimension_numbers = #tpu.dot_dimension_numbers<[1], [0], [0], [1], [0, 0, 1, 1], [], []>} : vector<8x128xf32>, vector<128x128xf32>, vector<8x128xf32> -> vector<8x128xf32>
    %c0_33 = arith.constant 0 : index
    %c0_34 = arith.constant 0 : index
    %67 = vector.load %arg11[%c0_33, %c0_34] : memref<8x128xf32, #tpu.memory_space<vmem>>, vector<8x128xf32>
    tpu.vector_store %arg11[%c0_33, %c0_34], %66 {strides = array<i32>} : memref<8x128xf32, #tpu.memory_space<vmem>>, vector<8x128xf32>,
    return
  }
  func.func @transform_0(%arg0: i32) -> (i32, i32) {
    %c0_i32 = arith.constant 0 : i32
    %c0_i32_0 = arith.constant 0 : i32
    return %arg0, %c0_i32 : i32, i32
  }
  func.func @transform_1(%arg0: i32) -> (i32, i32) {
    %c0_i32 = arith.constant 0 : i32
    %c0_i32_0 = arith.constant 0 : i32
    %c0_i32_1 = arith.constant 0 : i32
    return %c0_i32, %c0_i32_0 : i32, i32
  }
  func.func @transform_2(%arg0: i32) -> (i32, i32) {
    %c0_i32 = arith.constant 0 : i32
    %c0_i32_0 = arith.constant 0 : i32
    %c0_i32_1 = arith.constant 0 : i32
    return %c0_i32, %c0_i32_0 : i32, i32
  }
  func.func @transform_3(%arg0: i32) -> (i32, i32) {
    %c0_i32 = arith.constant 0 : i32
    %c0_i32_0 = arith.constant 0 : i32
    %c0_i32_1 = arith.constant 0 : i32
    return %c0_i32, %c0_i32_0 : i32, i32
  }
  func.func @transform_4(%arg0: i32) -> (i32, i32) {
    %c0_i32 = arith.constant 0 : i32
    %c0_i32_0 = arith.constant 0 : i32
    %c0_i32_1 = arith.constant 0 : i32
    return %c0_i32, %c0_i32_0 : i32, i32
  }
  func.func @transform_5(%arg0: i32) -> (i32, i32) {
    %c0_i32 = arith.constant 0 : i32
    %c0_i32_0 = arith.constant 0 : i32
    %c0_i32_1 = arith.constant 0 : i32
    return %c0_i32, %c0_i32_0 : i32, i32
  }
  func.func @transform_6(%arg0: i32) -> (i32, i32) {
    %c0_i32 = arith.constant 0 : i32
    %c0_i32_0 = arith.constant 0 : i32
    %c0_i32_1 = arith.constant 0 : i32
    return %c0_i32, %c0_i32_0 : i32, i32
  }
  func.func @transform_7(%arg0: i32) -> (i32, i32) {
    %c0_i32 = arith.constant 0 : i32
    %c0_i32_0 = arith.constant 0 : i32
    %c0_i32_1 = arith.constant 0 : i32
    return %c0_i32, %c0_i32_0 : i32, i32
  }
  func.func @transform_8(%arg0: i32) -> (i32, i32) {
    %c0_i32 = arith.constant 0 : i32
    %c0_i32_0 = arith.constant 0 : i32
    %c0_i32_1 = arith.constant 0 : i32
    return %c0_i32, %c0_i32_0 : i32, i32
  }
  func.func @transform_9(%arg0: i32) -> (i32, i32) {
    %c0_i32 = arith.constant 0 : i32
    %c0_i32_0 = arith.constant 0 : i32
    %c0_i32_1 = arith.constant 0 : i32
    return %c0_i32, %c0_i32_0 : i32, i32
  }
  func.func @transform_10(%arg0: i32) -> (i32, i32) {
    %c0_i32 = arith.constant 0 : i32
    %c0_i32_0 = arith.constant 0 : i32
    return %arg0, %c0_i32 : i32, i32
  }
}

module attributes {stable_mosaic.version = 11 : i64} {
  func.func @_fused_projector_kernel(%arg0: i32, %arg1: memref<8x128xf32, #tpu.memory_space<vmem>>, %arg2: memref<128x128xf32, #tpu.memory_space<vmem>>, %arg3: memref<1x128xf32, #tpu.memory_space<vmem>>, %arg4: memref<1x128xf32, #tpu.memory_space<vmem>>, %arg5: memref<128x128xf32, #tpu.memory_space<vmem>>, %arg6: memref<1x128xf32, #tpu.memory_space<vmem>>, %arg7: memref<1x128xf32, #tpu.memory_space<vmem>>, %arg8: memref<128x128xf32, #tpu.memory_space<vmem>>, %arg9: memref<1x128xf32, #tpu.memory_space<vmem>>, %arg10: memref<1x128xf32, #tpu.memory_space<vmem>>, %arg11: memref<8x128xf32, #tpu.memory_space<vmem>>) attributes {dimension_semantics = [#tpu.dimension_semantics<parallel>], iteration_bounds = array<i64: 2>, scalar_prefetch = 0 : i64, scratch_operands = 0 : i64, tpu.core_type = #tpu.core_type<tc>, window_params = [{transform_indices = @transform_0, window_bounds = array<i64: 8, 128>}, {pipeline_mode = #tpu.pipeline_mode<synchronous>, transform_indices = @transform_1, window_bounds = array<i64: 128, 128>}, {pipeline_mode = #tpu.pipeline_mode<synchronous>, transform_indices = @transform_2, window_bounds = array<i64: 1, 128>}, {pipeline_mode = #tpu.pipeline_mode<synchronous>, transform_indices = @transform_3, window_bounds = array<i64: 1, 128>}, {pipeline_mode = #tpu.pipeline_mode<synchronous>, transform_indices = @transform_4, window_bounds = array<i64: 128, 128>}, {pipeline_mode = #tpu.pipeline_mode<synchronous>, transform_indices = @transform_5, window_bounds = array<i64: 1, 128>}, {pipeline_mode = #tpu.pipeline_mode<synchronous>, transform_indices = @transform_6, window_bounds = array<i64: 1, 128>}, {pipeline_mode = #tpu.pipeline_mode<synchronous>, transform_indices = @transform_7, window_bounds = array<i64: 128, 128>}, {pipeline_mode = #tpu.pipeline_mode<synchronous>, transform_indices = @transform_8, window_bounds = array<i64: 1, 128>}, {pipeline_mode = #tpu.pipeline_mode<synchronous>, transform_indices = @transform_9, window_bounds = array<i64: 1, 128>}, {transform_indices = @transform_10, window_bounds = array<i64: 8, 128>}]} {
    %c0 = arith.constant 0 : index
    %c0_0 = arith.constant 0 : index
    %0 = vector.load %arg1[%c0, %c0_0] : memref<8x128xf32, #tpu.memory_space<vmem>>, vector<8x128xf32>
    %c0_1 = arith.constant 0 : index
    %c0_2 = arith.constant 0 : index
    %1 = vector.load %arg2[%c0_1, %c0_2] : memref<128x128xf32, #tpu.memory_space<vmem>>, vector<128x128xf32>
    %cst = arith.constant dense<0.000000e+00> : vector<8x128xf32>
    %2 = tpu.matmul %0, %1, %cst {dimension_numbers = #tpu.dot_dimension_numbers<[1], [0], [0], [1], [0, 0, 1, 1], [], []>} : vector<8x128xf32>, vector<128x128xf32>, vector<8x128xf32> -> vector<8x128xf32>
    %c0_3 = arith.constant 0 : index
    %c0_4 = arith.constant 0 : index
    %3 = vector.load %arg3[%c0_3, %c0_4] : memref<1x128xf32, #tpu.memory_space<vmem>>, vector<1x128xf32>
    %c0_5 = arith.constant 0 : index
    %c0_6 = arith.constant 0 : index
    %4 = vector.load %arg4[%c0_5, %c0_6] : memref<1x128xf32, #tpu.memory_space<vmem>>, vector<1x128xf32>
    %cst_7 = arith.constant dense<0.000000e+00> : vector<8xf32>
    %5 = vector.multi_reduction <add>, %2, %cst_7 [1] : vector<8x128xf32> to vector<8xf32>
    %6 = vector.shape_cast %5 : vector<8xf32> to vector<8x1xf32>
    %cst_8 = arith.constant 1.562500e-02 : f32
    %7 = vector.broadcast %cst_8 : f32 to vector<8x1xf32>
    %8 = arith.mulf %6, %7 : vector<8x1xf32>
    %9 = vector.broadcast %8 : vector<8x1xf32> to vector<8x128xf32>
    %10 = arith.subf %2, %9 : vector<8x128xf32>
    %11 = arith.mulf %10, %10 : vector<8x128xf32>
    %cst_9 = arith.constant dense<0.000000e+00> : vector<8xf32>
    %12 = vector.multi_reduction <add>, %11, %cst_9 [1] : vector<8x128xf32> to vector<8xf32>
    %13 = vector.shape_cast %12 : vector<8xf32> to vector<8x1xf32>
    %14 = arith.mulf %8, %8 : vector<8x1xf32>
    %cst_10 = arith.constant 6.400000e+01 : f32
    %15 = vector.broadcast %cst_10 : f32 to vector<8x1xf32>
    %16 = arith.mulf %15, %14 : vector<8x1xf32>
    %17 = arith.subf %13, %16 : vector<8x1xf32>
    %cst_11 = arith.constant 1.562500e-02 : f32
    %18 = vector.broadcast %cst_11 : f32 to vector<8x1xf32>
    %19 = arith.mulf %17, %18 : vector<8x1xf32>
    %cst_12 = arith.constant 0.000000e+00 : f32
    %20 = vector.broadcast %cst_12 : f32 to vector<8x1xf32>
    %21 = arith.maximumf %19, %20 : vector<8x1xf32>
    %cst_13 = arith.constant 9.99999974E-6 : f32
    %22 = vector.broadcast %cst_13 : f32 to vector<8x1xf32>
    %23 = arith.addf %21, %22 : vector<8x1xf32>
    %24 = math.rsqrt %23 : vector<8x1xf32>
    %25 = vector.broadcast %24 : vector<8x1xf32> to vector<8x128xf32>
    %26 = arith.mulf %10, %25 : vector<8x128xf32>
    %27 = vector.broadcast %3 : vector<1x128xf32> to vector<8x128xf32>
    %28 = arith.mulf %26, %27 : vector<8x128xf32>
    %29 = vector.broadcast %4 : vector<1x128xf32> to vector<8x128xf32>
    %30 = arith.addf %28, %29 : vector<8x128xf32>
    %cst_14 = arith.constant 0.000000e+00 : f32
    %31 = vector.broadcast %cst_14 : f32 to vector<8x128xf32>
    %32 = arith.maximumf %30, %31 : vector<8x128xf32>
    %c0_15 = arith.constant 0 : index
    %c0_16 = arith.constant 0 : index
    %33 = vector.load %arg5[%c0_15, %c0_16] : memref<128x128xf32, #tpu.memory_space<vmem>>, vector<128x128xf32>
    %cst_17 = arith.constant dense<0.000000e+00> : vector<8x128xf32>
    %34 = tpu.matmul %32, %33, %cst_17 {dimension_numbers = #tpu.dot_dimension_numbers<[1], [0], [0], [1], [0, 0, 1, 1], [], []>} : vector<8x128xf32>, vector<128x128xf32>, vector<8x128xf32> -> vector<8x128xf32>
    %c0_18 = arith.constant 0 : index
    %c0_19 = arith.constant 0 : index
    %35 = vector.load %arg6[%c0_18, %c0_19] : memref<1x128xf32, #tpu.memory_space<vmem>>, vector<1x128xf32>
    %c0_20 = arith.constant 0 : index
    %c0_21 = arith.constant 0 : index
    %36 = vector.load %arg7[%c0_20, %c0_21] : memref<1x128xf32, #tpu.memory_space<vmem>>, vector<1x128xf32>
    %cst_22 = arith.constant dense<0.000000e+00> : vector<8xf32>
    %37 = vector.multi_reduction <add>, %34, %cst_22 [1] : vector<8x128xf32> to vector<8xf32>
    %38 = vector.shape_cast %37 : vector<8xf32> to vector<8x1xf32>
    %cst_23 = arith.constant 1.562500e-02 : f32
    %39 = vector.broadcast %cst_23 : f32 to vector<8x1xf32>
    %40 = arith.mulf %38, %39 : vector<8x1xf32>
    %41 = vector.broadcast %40 : vector<8x1xf32> to vector<8x128xf32>
    %42 = arith.subf %34, %41 : vector<8x128xf32>
    %43 = arith.mulf %42, %42 : vector<8x128xf32>
    %cst_24 = arith.constant dense<0.000000e+00> : vector<8xf32>
    %44 = vector.multi_reduction <add>, %43, %cst_24 [1] : vector<8x128xf32> to vector<8xf32>
    %45 = vector.shape_cast %44 : vector<8xf32> to vector<8x1xf32>
    %46 = arith.mulf %40, %40 : vector<8x1xf32>
    %cst_25 = arith.constant 6.400000e+01 : f32
    %47 = vector.broadcast %cst_25 : f32 to vector<8x1xf32>
    %48 = arith.mulf %47, %46 : vector<8x1xf32>
    %49 = arith.subf %45, %48 : vector<8x1xf32>
    %cst_26 = arith.constant 1.562500e-02 : f32
    %50 = vector.broadcast %cst_26 : f32 to vector<8x1xf32>
    %51 = arith.mulf %49, %50 : vector<8x1xf32>
    %cst_27 = arith.constant 0.000000e+00 : f32
    %52 = vector.broadcast %cst_27 : f32 to vector<8x1xf32>
    %53 = arith.maximumf %51, %52 : vector<8x1xf32>
    %cst_28 = arith.constant 9.99999974E-6 : f32
    %54 = vector.broadcast %cst_28 : f32 to vector<8x1xf32>
    %55 = arith.addf %53, %54 : vector<8x1xf32>
    %56 = math.rsqrt %55 : vector<8x1xf32>
    %57 = vector.broadcast %56 : vector<8x1xf32> to vector<8x128xf32>
    %58 = arith.mulf %42, %57 : vector<8x128xf32>
    %59 = vector.broadcast %35 : vector<1x128xf32> to vector<8x128xf32>
    %60 = arith.mulf %58, %59 : vector<8x128xf32>
    %61 = vector.broadcast %36 : vector<1x128xf32> to vector<8x128xf32>
    %62 = arith.addf %60, %61 : vector<8x128xf32>
    %cst_29 = arith.constant 0.000000e+00 : f32
    %63 = vector.broadcast %cst_29 : f32 to vector<8x128xf32>
    %64 = arith.maximumf %62, %63 : vector<8x128xf32>
    %c0_30 = arith.constant 0 : index
    %c0_31 = arith.constant 0 : index
    %65 = vector.load %arg8[%c0_30, %c0_31] : memref<128x128xf32, #tpu.memory_space<vmem>>, vector<128x128xf32>
    %cst_32 = arith.constant dense<0.000000e+00> : vector<8x128xf32>
    %66 = tpu.matmul %64, %65, %cst_32 {dimension_numbers = #tpu.dot_dimension_numbers<[1], [0], [0], [1], [0, 0, 1, 1], [], []>} : vector<8x128xf32>, vector<128x128xf32>, vector<8x128xf32> -> vector<8x128xf32>
    %c0_33 = arith.constant 0 : index
    %c0_34 = arith.constant 0 : index
    %67 = vector.load %arg11[%c0_33, %c0_34] : memref<8x128xf32, #tpu.memory_space<vmem>>, vector<8x128xf32>
    tpu.vector_store %arg11[%c0_33, %c0_34], %66 {strides = array<i32>} : memref<8x128xf32, #tpu.memory_space<vmem>>, vector<8x128xf32>,
    return
  }
  func.func @transform_0(%arg0: i32) -> (i32, i32) {
    %c0_i32 = arith.constant 0 : i32
    %c0_i32_0 = arith.constant 0 : i32
    return %arg0, %c0_i32 : i32, i32
  }
  func.func @transform_1(%arg0: i32) -> (i32, i32) {
    %c0_i32 = arith.constant 0 : i32
    %c0_i32_0 = arith.constant 0 : i32
    %c0_i32_1 = arith.constant 0 : i32
    return %c0_i32, %c0_i32_0 : i32, i32
  }
  func.func @transform_2(%arg0: i32) -> (i32, i32) {
    %c0_i32 = arith.constant 0 : i32
    %c0_i32_0 = arith.constant 0 : i32
    %c0_i32_1 = arith.constant 0 : i32
    return %c0_i32, %c0_i32_0 : i32, i32
  }
  func.func @transform_3(%arg0: i32) -> (i32, i32) {
    %c0_i32 = arith.constant 0 : i32
    %c0_i32_0 = arith.constant 0 : i32
    %c0_i32_1 = arith.constant 0 : i32
    return %c0_i32, %c0_i32_0 : i32, i32
  }
  func.func @transform_4(%arg0: i32) -> (i32, i32) {
    %c0_i32 = arith.constant 0 : i32
    %c0_i32_0 = arith.constant 0 : i32
    %c0_i32_1 = arith.constant 0 : i32
    return %c0_i32, %c0_i32_0 : i32, i32
  }
  func.func @transform_5(%arg0: i32) -> (i32, i32) {
    %c0_i32 = arith.constant 0 : i32
    %c0_i32_0 = arith.constant 0 : i32
    %c0_i32_1 = arith.constant 0 : i32
    return %c0_i32, %c0_i32_0 : i32, i32
  }
  func.func @transform_6(%arg0: i32) -> (i32, i32) {
    %c0_i32 = arith.constant 0 : i32
    %c0_i32_0 = arith.constant 0 : i32
    %c0_i32_1 = arith.constant 0 : i32
    return %c0_i32, %c0_i32_0 : i32, i32
  }
  func.func @transform_7(%arg0: i32) -> (i32, i32) {
    %c0_i32 = arith.constant 0 : i32
    %c0_i32_0 = arith.constant 0 : i32
    %c0_i32_1 = arith.constant 0 : i32
    return %c0_i32, %c0_i32_0 : i32, i32
  }
  func.func @transform_8(%arg0: i32) -> (i32, i32) {
    %c0_i32 = arith.constant 0 : i32
    %c0_i32_0 = arith.constant 0 : i32
    %c0_i32_1 = arith.constant 0 : i32
    return %c0_i32, %c0_i32_0 : i32, i32
  }
  func.func @transform_9(%arg0: i32) -> (i32, i32) {
    %c0_i32 = arith.constant 0 : i32
    %c0_i32_0 = arith.constant 0 : i32
    %c0_i32_1 = arith.constant 0 : i32
    return %c0_i32, %c0_i32_0 : i32, i32
  }
  func.func @transform_10(%arg0: i32) -> (i32, i32) {
    %c0_i32 = arith.constant 0 : i32
    %c0_i32_0 = arith.constant 0 : i32
    return %arg0, %c0_i32 : i32, i32
  }
}

</mosaic_0001>

<bundles_post_ra>
// kernel: tpu_custom_call.1
= control target key start
LH: loop header
LB: loop body
LE: loop exit
PB: predicated region body
PF: predicated region fallthrough
CT: control target
= control target key end

     0   :  { %15 = vsyncpa [#allocation3], 0  ;;  %s1756_s0 = inlined_call_operand.hbm [shape: f32[16,128], index: 0, kind: input, shape index: {}]   ;;  %s1757_s1 = inlined_call_operand.hbm [shape: f32[128,128], index: 1, kind: input, shape index: {}]   ;;  %s1758_s2 = inlined_call_operand.vmem [shape: f32[1,128], index: 2, kind: input, shape index: {}]   ;;  %s1759_s3 = inlined_call_operand.vmem [shape: f32[1,128], index: 3, kind: input, shape index: {}]   ;;  %s1760_s4 = inlined_call_operand.hbm [shape: f32[128,128], index: 4, kind: input, shape index: {}]   ;;  %s1761_s5 = inlined_call_operand.vmem [shape: f32[1,128], index: 5, kind: input, shape index: {}]   ;;  %s1762_s6 = inlined_call_operand.vmem [shape: f32[1,128], index: 6, kind: input, shape index: {}]   ;;  %s1763_s7 = inlined_call_operand.hbm [shape: f32[128,128], index: 7, kind: input, shape index: {}]   ;;  %s1764_s8 = inlined_call_operand.vmem [shape: f32[1,128], index: 8, kind: input, shape index: {}]   ;;  %s1765_s9 = inlined_call_operand.vmem [shape: f32[1,128], index: 9, kind: input, shape index: {}]   ;;  %s1766_s10 = inlined_call_operand.hbm [shape: f32[16,128], index: 10, kind: output, shape index: {}]  }
   0x1   :  { %17 = vsyncpa [#allocation3 + $0x1], 0 }
   0x2   :  { %18 = vsyncpa [#allocation6], 0 }
   0x3   :  { %19 = vsyncpa [#allocation9], 0 }
   0x4   :  { %20 = vsyncpa [#allocation4], 0 }
   0x5   :  { %22 = vsyncpa [#allocation4 + $0x1], 0  ;;  %s1447_s13 = smov 0   ;;  %s1449_s14 = smov 0  }
   0x6   :  { %s1451_s15 = smov 0   ;;  %s1453_s16 = smov 0  }
   0x7 LB: > { %1772 = sst [smem:[#allocation15_spill]] %s1368_s13  ;;  %s1468_s8 = sadd.s32 4294967295, %s1380_s16   ;;  %s1380_s16 = sphi %s1453_s16, %s1795_s16   ;;  %s1376_s15 = sphi %s1451_s15, %s1794_s15   ;;  %s1372_s14 = sphi %s1449_s14, %s1793_s14   ;;  %s1368_s13 = sphi %s1447_s13, %s1792_s13  }
   0x8   : > { %s856_s9 = sadd.s32 4294967294, %s1380_s16   ;;  %p48_p0 = scmp.ne.s32.totalorder %s1372_s14, %s1368_s13 }
   0x9   : > { %p1767_p1 = scmp.eq.s32.totalorder %s1468_s8, 0  ;;  %p267_p3 = scmp.eq.s32.totalorder %s856_s9, 1 }
   0xa   : > { %p857_p5 = scmp.ge.s32.totalorder %s1380_s16, 1  ;;  %p274_p7 = scmp.lt.s32.totalorder %s1380_s16, 3 }
   0xb   : > { %p1477_p4 = por %p1767_p1, %p48_p0  ;;  %p1482_p6 = por %p267_p3, %p48_p0 }
   0xc   : > { %p1487_p8 = pnand %p857_p5, %p274_p7  ;;  %s1382_s20 = smov [#allocation5]  }
   0xd   : > { %s1773_s17 = scalar_select %p1477_p4, 1, 0 }
   0xe   : > { %s1774_s18 = scalar_select %p1482_p6, 1, 0 }
   0xf   : > { %s1776_s19 = scalar_select %p1487_p8, 1, 0 }
  0x10   : > { %1775 = sst [smem:[#allocation16_spill]] %s1774_s18  ;;  %s286_s21 = sshll.u32 %s1382_s20, 4  ;;  %s1491_s21 = int_to_ptr.vmem [resolvable:$true] %s286_s21 }
  0x11   : > { %p1122_p9 = pneg %p1487_p8  ;;  %s1383_s23 = smov [#allocation7]  }
  0x12   : > { %s305_s24 = sshll.u32 %s1383_s23, 4  ;;  %s1384_s25 = smov [#allocation8]   ;;  %s1502_s24 = int_to_ptr.vmem [resolvable:$true] %s305_s24 }
  0x13   : > { %p1498_p11 = pnand %p1122_p9, %p1767_p1  ;;  %s1504_s26 = sshll.u32 %s1384_s25, 4  ;;  %s325_s26 = int_to_ptr.vmem [resolvable:$true] %s1504_s26 }
  0x14   : > { %s1192_s29 = scalar_lea.hbm %s1757_s1, 2048 }
  0x15   : > { %p1193_p12 = scmp.ne.s32.totalorder %s1757_s1, %s1192_s29  ;;  %p1514_p13 = pneg %p1498_p11 }
  0x16   : > { %p1199_p5 = scmp.lt.u32.totalorder %s1192_s29, %s1757_s1 }
  0x17   : > { %p1195_p0 = pnand %p1514_p13, %p1193_p12 }
  0x19   : > { %p1196_p3 = pneg %p1195_p0 }
  0x1b   : > { %p1201_p7 = pnand %p1199_p5, %p1196_p3 }
  0x1d   : > { %1204 = shalt.err (!%p1201_p7)
}
  0x1e   : > { %s1205_s23 = scalar_lea.vmem %s1491_s21, 2048  ;;  %p1213_p2 = scmp.lt.s32.totalorder %s1491_s21, %s1491_s21 }
  0x1f   : > { %p1206_p9 = scmp.ne.s32.totalorder %s1491_s21, %s1205_s23  ;;  %p1214_p6 = scmp.lt.s32.totalorder %s1205_s23, %s1205_s23 }
  0x21   : > { %p1208_p10 = pnand %p1206_p9, %p1514_p13  ;;  %p1215_p12 = por %p1214_p6, %p1213_p2 }
  0x23   : > { %p1209_p1 = pneg %p1208_p10 }
  0x25   : > { %p1216_p0 = pnand %p1215_p12, %p1209_p1 }
  0x27   : > { %1219 = shalt.err (!%p1216_p0)
}
  0x28   : > { %s1385_s25 = smov 128   ;;  %s1386_s27 = smov 8  }
  0x29   : > { %1125 = dma.hbm_to_vmem [thread:$0]  (!%p1498_p11), %s1757_s1, 2048, %s1491_s21, [#allocation6], %s1385_s25, %s1385_s25, %s1386_s27  }
  0x2a   : > { %s1220_s9 = scalar_lea.hbm %s1760_s4, 2048 }
  0x2b   : > { %p1221_p1 = scmp.ne.s32.totalorder %s1760_s4, %s1220_s9  ;;  %p1227_p10 = scmp.lt.u32.totalorder %s1220_s9, %s1760_s4 }
  0x2d   : > { %p1223_p2 = pnand %p1221_p1, %p1514_p13 }
  0x2f   : > { %p1224_p6 = pneg %p1223_p2 }
  0x31   : > { %p1229_p3 = pnand %p1227_p10, %p1224_p6 }
  0x33   : > { %1232 = shalt.err (!%p1229_p3)
}
  0x34   : > { %s1233_s21 = scalar_lea.vmem %s1502_s24, 2048  ;;  %p1241_p12 = scmp.lt.s32.totalorder %s1502_s24, %s1502_s24 }
  0x35   : > { %p1234_p5 = scmp.ne.s32.totalorder %s1502_s24, %s1233_s21  ;;  %p1242_p0 = scmp.lt.s32.totalorder %s1233_s21, %s1233_s21 }
  0x37   : > { %p1236_p7 = pnand %p1234_p5, %p1514_p13  ;;  %p1243_p1 = por %p1242_p0, %p1241_p12 }
  0x39   : > { %p1237_p9 = pneg %p1236_p7 }
  0x3b   : > { %p1244_p2 = pnand %p1243_p1, %p1237_p9 }
  0x3d   : > { %1247 = shalt.err (!%p1244_p2)
}
  0x3e   : > { %1128 = dma.hbm_to_vmem [thread:$0]  (!%p1498_p11), %s1760_s4, 2048, %s1502_s24, [#allocation6], %s1385_s25, %s1385_s25, %s1386_s27  }
  0x3f   : > { %s1248_s30 = scalar_lea.hbm %s1763_s7, 2048 }
  0x40   : > { %p1249_p6 = scmp.ne.s32.totalorder %s1763_s7, %s1248_s30  ;;  %p1255_p5 = scmp.lt.u32.totalorder %s1248_s30, %s1763_s7 }
  0x42   : > { %p1251_p10 = pnand %p1249_p6, %p1514_p13 }
  0x44   : > { %p1252_p3 = pneg %p1251_p10 }
  0x46   : > { %p1257_p7 = pnand %p1255_p5, %p1252_p3 }
  0x48   : > { %1260 = shalt.err (!%p1257_p7)
}
  0x49   : > { %s1261_s21 = scalar_lea.vmem %s325_s26, 2048  ;;  %p1269_p1 = scmp.lt.s32.totalorder %s325_s26, %s325_s26 }
  0x4a   : > { %p1262_p9 = scmp.ne.s32.totalorder %s325_s26, %s1261_s21  ;;  %p1270_p2 = scmp.lt.s32.totalorder %s1261_s21, %s1261_s21 }
  0x4c   : > { %p1264_p12 = pnand %p1262_p9, %p1514_p13  ;;  %p1271_p4 = por %p1270_p2, %p1269_p1 }
  0x4e   : > { %p1265_p0 = pneg %p1264_p12 }
  0x50   : > { %p1272_p8 = pnand %p1271_p4, %p1265_p0 }
  0x52   : > { %1275 = shalt.err (!%p1272_p8)
}
  0x53   : > { %1131 = dma.hbm_to_vmem [thread:$0]  (!%p1498_p11), %s1763_s7, 2048, %s325_s26, [#allocation9], %s1385_s25, %s1385_s25, %s1386_s27  }
  0x54   : > { %s1587_s12 = sadd.s32 1, %s1380_s16   ;;  %s35_s18 = sadd.s32 1, %s1376_s15 }
  0x55   : > { %s32_s22 = ssub.s32 %s1380_s16, %s1587_s12  ;;  %p42_p8 = scmp.ne.s32.totalorder %s1376_s15, %s1372_s14 }
  0x56   : > { %p33_p4 = scmp.eq.s32.totalorder %s32_s22, 0  ;;  %p43_p13 = scmp.eq.s32.totalorder %s1380_s16, 0 }
  0x57   : > { %p1143_p6 = scmp.lt.s32.totalorder %s1380_s16, 2  ;;  %p1779_p3 = scmp.eq.s32.totalorder %s1468_s8, 1 }
  0x58   : > { %s1597_s28 = scalar_select %p33_p4, %s1376_s15, %s35_s18  }
  0x59   : > { %p44_p10 = por %p43_p13, %p42_p8  ;;  %p1601_p5 = por %p1779_p3, %p42_p8 }
  0x5a   : > { %s344_s30 = sand.u32 1, %s1376_s15   ;;  %s863_s11 = sshll.u32 %s1380_s16, 7 }
  0x5b   : > { %s862_s26 = sshll.u32 %s344_s30, 3  ;;  %s1610_s9 = scalar_lea.hbm %s1756_s0, %s863_s11 }
  0x5c   : > { %s348_s20 = scalar_lea.vmem [#allocation2], %s862_s26  ;;  %p1612_p11 = pnand %p1143_p6, %p44_p10 }
  0x5d   : > { %s355_s23 = sshll.u32 %s348_s20, 4  ;;  %s345_s24 = scalar_lea.sflag [#allocation3], %s344_s30  ;;  %s1616_s23 = int_to_ptr.vmem [resolvable:$true] %s355_s23 }
  0x5e   : > { %s1276_s13 = scalar_lea.hbm %s1610_s9, 128  ;;  %p1278_p9 = pneg %p1612_p11 }
  0x5f   : > { %p1277_p7 = scmp.ne.s32.totalorder %s1610_s9, %s1276_s13  ;;  %s1281_s11 = scalar_lea.hbm %s1756_s0, 256 }
  0x60   : > { %p1282_p1 = scmp.lt.u32.totalorder %s1610_s9, %s1756_s0  ;;  %p1283_p2 = scmp.lt.u32.totalorder %s1281_s11, %s1276_s13 }
  0x61   : > { %p1279_p12 = pnand %p1278_p9, %p1277_p7  ;;  %p1285_p8 = scmp.lt.u32.totalorder %s1276_s13, %s1610_s9 }
  0x62   : > { %p1284_p4 = por %p1283_p2, %p1282_p1 }
  0x63   : > { %p1280_p0 = pneg %p1279_p12 }
  0x64   : > { %p1286_p13 = por %p1285_p8, %p1284_p4 }
  0x66   : > { %p1287_p6 = pnand %p1286_p13, %p1280_p0 }
  0x68   : > { %1290 = shalt.err (!%p1287_p6)
}
  0x69   : > { %s1291_s30 = scalar_lea.vmem %s1616_s23, 128  ;;  %s1387_s27 = smov [#allocation2]  }
  0x6a   : > { %p1292_p10 = scmp.ne.s32.totalorder %s1616_s23, %s1291_s30  ;;  %s1296_s20 = sshll.u32 %s1387_s27, 4  ;;  %s1297_s20 = int_to_ptr.vmem [resolvable:$false] %s1296_s20 }
  0x6b   : > { %s1298_s22 = scalar_lea.vmem %s1297_s20, 256  ;;  %p1299_p12 = scmp.lt.s32.totalorder %s1616_s23, %s1297_s20 }
  0x6c   : > { %p1294_p3 = pnand %p1292_p10, %p1278_p9  ;;  %p1300_p1 = scmp.lt.s32.totalorder %s1298_s22, %s1291_s30 }
  0x6e   : > { %p1295_p7 = pneg %p1294_p3  ;;  %p1301_p2 = por %p1300_p1, %p1299_p12 }
  0x70   : > { %p1302_p4 = pnand %p1301_p2, %p1295_p7 }
  0x72   : > { %1305 = shalt.err (!%p1302_p4)
}
  0x73   : > { %1135 = dma.hbm_to_vmem [thread:$0]  (!%p1612_p11), %s1610_s9, 128, %s1616_s23, %s345_s24  }
  0x74   : > { %p1782_p0 = scmp.ne.s32.totalorder %s1776_s19, 0 }
  0x75   : > { %s1646_s13 = sand.u32 (!%p1782_p0), 1, %s1372_s14   ;;  %p1783_p9 = scmp.ne.s32.totalorder (!%p1782_p0), %s1773_s17, 0 }
  0x76   : > { %364 = sbr.rel (%p1782_p0) target bundleno = 1452 (0x5ac), region = 60  ;;  %s865_s18 = sshll.u32 (!%p1782_p0), %s1646_s13, 3 }
  0x77   : > { %s367_s11 = scalar_lea.sflag (!%p1782_p0), [#allocation3], %s1646_s13  ;;  %s1652_s26 = scalar_lea.vmem (!%p1782_p0), [#allocation2], %s865_s18 }
  0x7d   : > { %1351 = dma.done.wait (%p1783_p9), %s367_s11, 128  }
  0x7e   : > { %1353 = vsyncadd (%p1783_p9), %s367_s11, 4294967168  ;;  %p1784_p11 = scmp.eq.s32.totalorder %s1468_s8, 0 }
  0x80   : > { %1355 = dma.done.wait (%p1784_p11), [#allocation6], 4096   ;;  %p1785_p8 = pmov %p1784_p11 }
  0x82   : > { %1357 = vsyncadd (%p1785_p8), [#allocation6], 4294963200  ;;  %p1786_p13 = pmov %p1785_p8 }
  0x83   : > { %p1787_p6 = pmov %p1785_p8 }
  0x84   : > { %1359 = dma.done.wait (%p1786_p13), [#allocation9], 2048  }
  0x85   : > { %1361 = vsyncadd (%p1787_p6), [#allocation9], 4294965248  ;;  %v1388_v0 = vmov 0.0|0.0   ;;  %vm1389_vm0 = vmmov 0   ;;  %v1390_v1 = vmov 0.0   ;;  %v420_v2 = vld [vmem:[#allocation5] sm:$0xff] }
  0x86   : > { %1034 = vmatprep.subr.bf16.mxu0 %v1388_v0  ;;  %961 = vmatprep.mubr.msk.f32.mxu0 %vm1389_vm0, %v1390_v1  ;;  %v421_v3 = vld [vmem:[#allocation5 + $0x8] sm:$0xff]  ;;  %v422_v4 = vld [vmem:[#allocation5 + $0x10] sm:$0xff]  ;;  %v423_v6 = vld [vmem:[#allocation5 + $0x18] sm:$0xff]  ;;  %s418_s27 = scalar_lea.vmem [#allocation10], %s865_s18  ;;  %s875_s22 = sshll.u32 %s1468_s8, 7 }
  0x87   : > { %1058 = vmatprep.subr.bf16.mxu1 %v1388_v0  ;;  %996 = vmatprep.mubr.msk.f32.mxu1 %vm1389_vm0, %v1390_v1  ;;  %v1035_v5 = vpack.c.bf16 %v421_v3, %v420_v2  ;;  %v1038_v7 = vpack.c.bf16 %v423_v6, %v422_v4  ;;  %v424_v8 = vld [vmem:[#allocation5 + $0x20] sm:$0xff]  ;;  %v425_v9 = vld [vmem:[#allocation5 + $0x28] sm:$0xff]  ;;  %v426_v11 = vld [vmem:[#allocation5 + $0x30] sm:$0xff]  ;;  %s757_s20 = sshll.u32 %s418_s27, 4  ;;  %s1714_s17 = scalar_lea.hbm %s1766_s10, %s875_s22  ;;  %s1709_s20 = int_to_ptr.vmem [resolvable:$true] %s757_s20 }
  0x88   : > { %v1041_v10 = vpack.c.bf16 %v425_v9, %v424_v8  ;;  %v427_v12 = vld [vmem:[#allocation5 + $0x38] sm:$0xff]  ;;  %v428_v14 = vld [vmem:[#allocation5 + $0x40] sm:$0xff]  ;;  %v429_v15 = vld [vmem:[#allocation5 + $0x48] sm:$0xff]  ;;  %s744_s19 = scalar_lea.sflag [#allocation4], %s1646_s13  ;;  %s1306_s9 = scalar_lea.vmem %s1709_s20, 128 }
  0x89   : > { %1036 = vmatpush3.bf16.msra.mxu0 %v1035_v5  ;;  %v1044_v13 = vpack.c.bf16 %v427_v12, %v426_v11  ;;  %v1047_v16 = vpack.c.bf16 %v429_v15, %v428_v14  ;;  %v430_v17 = vld [vmem:[#allocation5 + $0x50] sm:$0xff]  ;;  %v431_v18 = vld [vmem:[#allocation5 + $0x58] sm:$0xff]  ;;  %v432_v20 = vld [vmem:[#allocation5 + $0x60] sm:$0xff]  ;;  %p1307_p10 = scmp.ne.s32.totalorder %s1709_s20, %s1306_s9  ;;  %s1391_s8 = smov [#allocation10]  }
  0x8a   : > { %1037 = vmatprep.subr.bf16.mxu0 %v1388_v0  ;;  %v1050_v19 = vpack.c.bf16 %v431_v18, %v430_v17  ;;  %v433_v21 = vld [vmem:[#allocation5 + $0x68] sm:$0xff]  ;;  %v434_v23 = vld [vmem:[#allocation5 + $0x70] sm:$0xff]  ;;  %v435_v24 = vld [vmem:[#allocation5 + $0x78] sm:$0xff]  ;;  %s1310_s18 = sshll.u32 %s1391_s8, 4  ;;  %s1311_s18 = int_to_ptr.vmem [resolvable:$false] %s1310_s18 }
  0x8b   : > { %v1053_v22 = vpack.c.bf16 %v433_v21, %v432_v20  ;;  %v1056_v25 = vpack.c.bf16 %v435_v24, %v434_v23  ;;  %v419_v26 = vld [vmem:[%s1652_s26] sm:$0xff]  ;;  %v538_v29 = vld [vmem:[#allocation7] sm:$0xff]  ;;  %v539_v30 = vld [vmem:[#allocation7 + $0x8] sm:$0xff]  ;;  %p1308_p3 = pnand %p1307_p10, %p1601_p5  ;;  %s1312_s23 = scalar_lea.vmem %s1311_s18, 256 }
  0x8c   : > { %v1059_v31 = vpack.c.bf16 %v539_v30, %v538_v29  ;;  %v540_v36 = vld [vmem:[#allocation7 + $0x10] sm:$0xff]  ;;  %v541_v37 = vld [vmem:[#allocation7 + $0x18] sm:$0xff]  ;;  %v542_v39 = vld [vmem:[#allocation7 + $0x20] sm:$0xff]  ;;  %p1313_p12 = scmp.lt.s32.totalorder %s1709_s20, %s1311_s18  ;;  %p1314_p1 = scmp.lt.s32.totalorder %s1312_s23, %s1306_s9 }
  0x8d   : > { %1039 = vmatpush3.bf16.msra.mxu0 %v1038_v7  ;;  %v1062_v38 = vpack.c.bf16 %v541_v37, %v540_v36  ;;  %v543_v40 = vld [vmem:[#allocation7 + $0x28] sm:$0xff]  ;;  %v544_v42 = vld [vmem:[#allocation7 + $0x30] sm:$0xff]  ;;  %v545_v43 = vld [vmem:[#allocation7 + $0x38] sm:$0xff]  ;;  %p1309_p7 = pneg %p1308_p3 }
  0x8e   : > { %1040 = vmatprep.subr.bf16.mxu0 %v1388_v0  ;;  %1060 = vmatpush3.bf16.msra.mxu1 %v1059_v31  ;;  %v1065_v41 = vpack.c.bf16 %v543_v40, %v542_v39  ;;  %v1068_v44 = vpack.c.bf16 %v545_v43, %v544_v42  ;;  %v546_v45 = vld [vmem:[#allocation7 + $0x40] sm:$0xff]  ;;  %v547_v46 = vld [vmem:[#allocation7 + $0x48] sm:$0xff]  ;;  %v548_v48 = vld [vmem:[#allocation7 + $0x50] sm:$0xff]  ;;  %p1315_p2 = por %p1314_p1, %p1313_p12 }
  0x8f   : > { %1061 = vmatprep.subr.bf16.mxu1 %v1388_v0  ;;  %v1071_v47 = vpack.c.bf16 %v547_v46, %v546_v45  ;;  %v549_v49 = vld [vmem:[#allocation7 + $0x58] sm:$0xff]  ;;  %v550_v51 = vld [vmem:[#allocation7 + $0x60] sm:$0xff]  ;;  %v551_v52 = vld [vmem:[#allocation7 + $0x68] sm:$0xff] }
  0x90   : > { %v1074_v50 = vpack.c.bf16 %v549_v49, %v548_v48  ;;  %v1077_v53 = vpack.c.bf16 %v551_v52, %v550_v51  ;;  %v552_v54 = vld [vmem:[#allocation7 + $0x70] sm:$0xff]  ;;  %v553_v55 = vld [vmem:[#allocation7 + $0x78] sm:$0xff]  ;;  %v657_v11 = vld [vmem:[#allocation8 + $0x8] sm:$0xff]  ;;  %p1316_p4 = pnand %p1315_p2, %p1309_p7 }
  0x91   : > { %1042 = vmatpush3.bf16.msra.mxu0 %v1041_v10  ;;  %v1080_v56 = vpack.c.bf16 %v553_v55, %v552_v54  ;;  %v870_v2 = vld [vmem:[%s1758_s2] ss:$0 sm:$0xff]  ;;  %v656_v10 = vld [vmem:[#allocation8] sm:$0xff]  ;;  %v659_v18 = vld [vmem:[#allocation8 + $0x18] sm:$0xff] }
  0x92   : > { %1043 = vmatprep.subr.bf16.mxu0 %v1388_v0  ;;  %1063 = vmatpush3.bf16.msra.mxu1 %v1062_v38  ;;  %v871_v4 = vld [vmem:[%s1759_s3] ss:$0 sm:$0xff]  ;;  %v1083_v12 = vpack.c.bf16 %v657_v11, %v656_v10  ;;  %v660_v20 = vld [vmem:[#allocation8 + $0x20] sm:$0xff]  ;;  %v661_v21 = vld [vmem:[#allocation8 + $0x28] sm:$0xff] }
  0x93   : > { %1064 = vmatprep.subr.bf16.mxu1 %v1388_v0  ;;  %v658_v17 = vld [vmem:[#allocation8 + $0x10] sm:$0xff]  ;;  %v663_v24 = vld [vmem:[#allocation8 + $0x38] sm:$0xff] }
  0x94   : > { %v662_v23 = vld [vmem:[#allocation8 + $0x30] sm:$0xff]  ;;  %v667_v30 = vld [vmem:[#allocation8 + $0x58] sm:$0xff] }
  0x95   : > { %1045 = vmatpush3.bf16.msra.mxu0 %v1044_v13  ;;  %v666_v29 = vld [vmem:[#allocation8 + $0x50] sm:$0xff]  ;;  %v671_v36 = vld [vmem:[#allocation8 + $0x78] sm:$0xff] }
  0x96   : > { %1046 = vmatprep.subr.bf16.mxu0 %v1388_v0  ;;  %1066 = vmatpush3.bf16.msra.mxu1 %v1065_v41  ;;  %v1098_v31 = vpack.c.bf16 %v667_v30, %v666_v29  ;;  %v872_v46 = vld [vmem:[%s1761_s5] ss:$0 sm:$0xff] }
  0x97   : > { %1067 = vmatprep.subr.bf16.mxu1 %v1388_v0 }
  0x99   : > { %1048 = vmatpush3.bf16.msra.mxu0 %v1047_v16 }
  0x9a   : > { %1049 = vmatprep.subr.bf16.mxu0 %v1388_v0  ;;  %1069 = vmatpush3.bf16.msra.mxu1 %v1068_v44 }
  0x9b   : > { %1070 = vmatprep.subr.bf16.mxu1 %v1388_v0 }
  0x9d   : > { %1051 = vmatpush3.bf16.msra.mxu0 %v1050_v19  ;;  %v1086_v19 = vpack.c.bf16 %v659_v18, %v658_v17 }
  0x9e   : > { %1052 = vmatprep.subr.bf16.mxu0 %v1388_v0  ;;  %1072 = vmatpush3.bf16.msra.mxu1 %v1071_v47 }
  0x9f   : > { %1073 = vmatprep.subr.bf16.mxu1 %v1388_v0 }
  0xa1   : > { %1054 = vmatpush3.bf16.msra.mxu0 %v1053_v22  ;;  %v1089_v22 = vpack.c.bf16 %v661_v21, %v660_v20 }
  0xa2   : > { %1055 = vmatprep.subr.bf16.mxu0 %v1388_v0  ;;  %1075 = vmatpush3.bf16.msra.mxu1 %v1074_v50 }
  0xa3   : > { %1076 = vmatprep.subr.bf16.mxu1 %v1388_v0 }
  0xa5   : > { %1057 = vmatpush3.bf16.msra.mxu0 %v1056_v25  ;;  %v1092_v25 = vpack.c.bf16 %v663_v24, %v662_v23 }
  0xa6   : > { %1082 = vmatprep.subr.bf16.mxu0 %v1388_v0  ;;  %1078 = vmatpush3.bf16.msra.mxu1 %v1077_v53 }
  0xa7   : > { %1079 = vmatprep.subr.bf16.mxu1 %v1388_v0 }
  0xa8   : > { %962 = vmatmul.mubr.f32.vlgmr.msra.gmra.mrb[0].mxu0 %v419_v26  ;;  %v664_v26 = vld [vmem:[#allocation8 + $0x40] sm:$0xff] }
  0xa9   : > { %1031 = vmatprep.mubr.msk.f32.mxu0 %vm1389_vm0, %v1390_v1  ;;  %1084 = vmatpush3.bf16.msra.mxu0 %v1083_v12 }
  0xaa   : > { %1081 = vmatpush3.bf16.msra.mxu1 %v1080_v56  ;;  %1085 = vmatprep.subr.bf16.mxu0 %v1388_v0 }
  0xad   : > { %1087 = vmatpush3.bf16.msra.mxu0 %v1086_v19 }
  0xae   : > { %1088 = vmatprep.subr.bf16.mxu0 %v1388_v0 }
  0xb1   : > { %1090 = vmatpush3.bf16.msra.mxu0 %v1089_v22 }
  0xb2   : > { %1091 = vmatprep.subr.bf16.mxu0 %v1388_v0 }
  0xb5   : > { %1093 = vmatpush3.bf16.msra.mxu0 %v1092_v25 }
  0xb6   : > { %1094 = vmatprep.subr.bf16.mxu0 %v1388_v0 }
 0x17b   : > { %v502_v27 = vpop.f32.mrb[0].mxu0 }
 0x17c   : > { %508 = vadd.xlane.f32.xlu0 %v502_v27  ;;  %v963_v28 = vpop.f32.mrb[1].mxu0 }
 0x209   : > { %v509_v32 = vpop.xlane.xlu0 %508 }
 0x20a   : > { %v510_v33 = vmul.f32 0.015625, %v509_v32  ;;  %v668_v32 = vld [vmem:[#allocation8 + $0x60] sm:$0xff] }
 0x20c   : > { %v511_v34 = vsub.f32 %v502_v27, %v510_v33  ;;  %v515_v57 = vmul.f32 %v510_v33, %v510_v33  ;;  %v665_v27 = vld [vmem:[#allocation8 + $0x48] sm:$0xff] }
 0x20d   : > { %v1095_v28 = vpack.c.bf16 %v665_v27, %v664_v26  ;;  %v669_v33 = vld [vmem:[#allocation8 + $0x68] sm:$0xff] }
 0x20e   : > { %v512_v35 = vmul.f32 %v511_v34, %v511_v34  ;;  %v516_v58 = vmul.f32 64.0, %v515_v57 }
 0x20f   : > { %1096 = vmatpush3.bf16.msra.mxu0 %v1095_v28 }
 0x210   : > { %513 = vadd.xlane.f32.xlu0 %v512_v35  ;;  %1097 = vmatprep.subr.bf16.mxu0 %v1388_v0  ;;  %v670_v35 = vld [vmem:[#allocation8 + $0x70] sm:$0xff] }
 0x211   : > { %v1104_v37 = vpack.c.bf16 %v671_v36, %v670_v35 }
 0x213   : > { %1099 = vmatpush3.bf16.msra.mxu0 %v1098_v31 }
 0x214   : > { %1100 = vmatprep.subr.bf16.mxu0 %v1388_v0 }
 0x29d   : > { %v514_v59 = vpop.xlane.xlu0 %513 }
 0x29e   : > { %v517_v60 = vsub.f32 %v514_v59, %v516_v58 }
 0x2a0   : > { %v518_v61 = vmul.f32 0.015625, %v517_v60 }
 0x2a2   : > { %v519_v62 = vmax.f32 %v518_v61, 0.0 }
 0x2a4   : > { %v520_v63 = vadd.f32 1e-05, %v519_v62 }
 0x2a6   : > { %1188 = vrsqrt.f32 %v520_v63 }
 0x2b0   : > { %v1189_v1 = vpop.eup %1188 }
 0x2b1   : > { %v522_v3 = vmul.f32 %v1189_v1, %v511_v34  ;;  %v1101_v34 = vpack.c.bf16 %v669_v33, %v668_v32 }
 0x2b3   : > { %v529_v5 = vmul.f32 %v870_v2, %v522_v3  ;;  %1102 = vmatpush3.bf16.msra.mxu0 %v1101_v34 }
 0x2b4   : > { %1103 = vmatprep.subr.bf16.mxu0 %v1388_v0  ;;  %v873_v0 = vld [vmem:[%s1762_s6] ss:$0 sm:$0xff] }
 0x2b5   : > { %v536_v6 = vadd.f32 %v871_v4, %v529_v5 }
 0x2b7   : > { %v537_v7 = vmax.f32 %v536_v6, 0.0  ;;  %1105 = vmatpush3.bf16.msra.mxu0 %v1104_v37 }
 0x2b9   : > { %997 = vmatmul.mubr.f32.vlgmr.msra.gmra.mrb[0].mxu1 %v537_v7 }
 0x38c   : > { %v620_v8 = vpop.f32.mrb[0].mxu1 }
 0x38d   : > { %626 = vadd.xlane.f32.xlu1 %v620_v8  ;;  %v998_v9 = vpop.f32.mrb[1].mxu1 }
 0x41a   : > { %v627_v13 = vpop.xlane.xlu1 %626 }
 0x41b   : > { %v628_v14 = vmul.f32 0.015625, %v627_v13 }
 0x41d   : > { %v629_v15 = vsub.f32 %v620_v8, %v628_v14  ;;  %v633_v38 = vmul.f32 %v628_v14, %v628_v14 }
 0x41f   : > { %v630_v16 = vmul.f32 %v629_v15, %v629_v15  ;;  %v634_v39 = vmul.f32 64.0, %v633_v38 }
 0x421   : > { %631 = vadd.xlane.f32.xlu1 %v630_v16 }
 0x4ae   : > { %v632_v40 = vpop.xlane.xlu1 %631 }
 0x4af   : > { %v635_v41 = vsub.f32 %v632_v40, %v634_v39 }
 0x4b1   : > { %v636_v42 = vmul.f32 0.015625, %v635_v41 }
 0x4b3   : > { %v637_v43 = vmax.f32 %v636_v42, 0.0 }
 0x4b5   : > { %v638_v44 = vadd.f32 1e-05, %v637_v43 }
 0x4b7   : > { %1190 = vrsqrt.f32 %v638_v44 }
 0x4c1   : > { %v1191_v45 = vpop.eup %1190 }
 0x4c2   : > { %v640_v47 = vmul.f32 %v1191_v45, %v629_v15 }
 0x4c4   : > { %v647_v48 = vmul.f32 %v872_v46, %v640_v47 }
 0x4c6   : > { %v654_v49 = vadd.f32 %v873_v0, %v647_v48 }
 0x4c8   : > { %v655_v50 = vmax.f32 %v654_v49, 0.0 }
 0x4ca   : > { %1032 = vmatmul.mubr.f32.vlgmr.msra.gmra.mrb[2].mxu0 %v655_v50 }
 0x59d   : > { %v738_v51 = vpop.f32.mrb[2].mxu0 }
 0x59e   : > { %742 = vst [vmem:[%s418_s27] sm:$0xff] %v738_v51  ;;  %v1033_v52 = vpop.f32.mrb[3].mxu0 }
 0x59f   : > { %1319 = shalt.err (!%p1316_p4)
}
 0x5a0   : > { %s1320_s13 = scalar_lea.hbm %s1714_s17, 128  ;;  %s1324_s25 = scalar_lea.hbm %s1766_s10, 256 }
 0x5a1   : > { %p1321_p0 = scmp.ne.s32.totalorder %s1714_s17, %s1320_s13  ;;  %p1325_p8 = scmp.lt.u32.totalorder %s1714_s17, %s1766_s10 }
 0x5a2   : > { %p1326_p13 = scmp.lt.u32.totalorder %s1324_s25, %s1320_s13  ;;  %p1328_p10 = scmp.lt.u32.totalorder %s1320_s13, %s1714_s17 }
 0x5a3   : > { %p1322_p9 = pnand %p1321_p0, %p1601_p5 }
 0x5a4   : > { %p1327_p6 = por %p1326_p13, %p1325_p8 }
 0x5a5   : > { %p1323_p11 = pneg %p1322_p9 }
 0x5a6   : > { %p1329_p3 = por %p1328_p10, %p1327_p6 }
 0x5a8   : > { %p1330_p7 = pnand %p1329_p3, %p1323_p11 }
 0x5aa   : > { %1333 = shalt.err (!%p1330_p7)
}
 0x5ab   : > { %1120 = dma.vmem_to_hbm [thread:$0]  (%p1601_p5), %s1709_s20, 128, %s1714_s17, %s744_s19  }
 0x5ac PF: > { %s1788_s22 = sld [smem:[#allocation15_spill]]  ;;  %s1789_s11 = sld [smem:[#allocation16_spill]] }
 0x5ad   : > { %p1791_p1 = scmp.ge.s32.totalorder %s1380_s16, 2 }
 0x5b2   : > { %s769_s26 = sand.u32 1, %s1788_s22   ;;  %p1790_p12 = scmp.ne.s32.totalorder %s1789_s11, 0 }
 0x5b3   : > { %s770_s9 = scalar_lea.sflag [#allocation4], %s769_s26 }
 0x5b4   : > { %p1137_p2 = pnand %p1791_p1, %p1790_p12 }
 0x5b6   : > { %1363 = dma.done.wait (!%p1137_p2), %s770_s9, 128  }
 0x5b7   : > { %1365 = vsyncadd (!%p1137_p2), %s770_s9, 4294967168  ;;  %p25_p4 = scmp.ge.s32.totalorder %s1587_s12, 4   ;;  %s1792_s13 = smov %s1372_s14 }
 0x5b8   : > { %s1793_s14 = smov %s1376_s15  ;;  %s1794_s15 = smov %s1597_s28 }
 0x5b9   : > { %s1795_s16 = smov %s1587_s12  ;;  %27 = sbr.rel (!%p25_p4) target bundleno = 7 (0x7), region = 117 }
 0x5c0   :  { %775 = vsyncpa [#allocation3], 1 }
 0x5c1   :  { %777 = vsyncpa [#allocation3 + $0x1], 1 }
 0x5c2   :  { %778 = vsyncpa [#allocation6], 1 }
 0x5c3   :  { %779 = vsyncpa [#allocation9], 1 }
 0x5c4   :  { %780 = vsyncpa [#allocation4], 1 }
 0x5c5   :  { %782 = vsyncpa [#allocation4 + $0x1], 1 }

// kernel: tpu_custom_call.1
= control target key start
LH: loop header
LB: loop body
LE: loop exit
PB: predicated region body
PF: predicated region fallthrough
CT: control target
= control target key end

     0   :  { %15 = vsyncpa [#allocation3], 0  ;;  %s1756_s0 = inlined_call_operand.hbm [shape: f32[16,128], index: 0, kind: input, shape index: {}]   ;;  %s1757_s1 = inlined_call_operand.hbm [shape: f32[128,128], index: 1, kind: input, shape index: {}]   ;;  %s1758_s2 = inlined_call_operand.vmem [shape: f32[1,128], index: 2, kind: input, shape index: {}]   ;;  %s1759_s3 = inlined_call_operand.vmem [shape: f32[1,128], index: 3, kind: input, shape index: {}]   ;;  %s1760_s4 = inlined_call_operand.hbm [shape: f32[128,128], index: 4, kind: input, shape index: {}]   ;;  %s1761_s5 = inlined_call_operand.vmem [shape: f32[1,128], index: 5, kind: input, shape index: {}]   ;;  %s1762_s6 = inlined_call_operand.vmem [shape: f32[1,128], index: 6, kind: input, shape index: {}]   ;;  %s1763_s7 = inlined_call_operand.hbm [shape: f32[128,128], index: 7, kind: input, shape index: {}]   ;;  %s1764_s8 = inlined_call_operand.vmem [shape: f32[1,128], index: 8, kind: input, shape index: {}]   ;;  %s1765_s9 = inlined_call_operand.vmem [shape: f32[1,128], index: 9, kind: input, shape index: {}]   ;;  %s1766_s10 = inlined_call_operand.hbm [shape: f32[16,128], index: 10, kind: output, shape index: {}]  }
   0x1   :  { %17 = vsyncpa [#allocation3 + $0x1], 0 }
   0x2   :  { %18 = vsyncpa [#allocation6], 0 }
   0x3   :  { %19 = vsyncpa [#allocation9], 0 }
   0x4   :  { %20 = vsyncpa [#allocation4], 0 }
   0x5   :  { %22 = vsyncpa [#allocation4 + $0x1], 0  ;;  %s1447_s13 = smov 0   ;;  %s1449_s14 = smov 0  }
   0x6   :  { %s1451_s15 = smov 0   ;;  %s1453_s16 = smov 0  }
   0x7 LB: > { %1772 = sst [smem:[#allocation15_spill]] %s1368_s13  ;;  %s1468_s8 = sadd.s32 4294967295, %s1380_s16   ;;  %s1380_s16 = sphi %s1453_s16, %s1795_s16   ;;  %s1376_s15 = sphi %s1451_s15, %s1794_s15   ;;  %s1372_s14 = sphi %s1449_s14, %s1793_s14   ;;  %s1368_s13 = sphi %s1447_s13, %s1792_s13  }
   0x8   : > { %s856_s9 = sadd.s32 4294967294, %s1380_s16   ;;  %p48_p0 = scmp.ne.s32.totalorder %s1372_s14, %s1368_s13 }
   0x9   : > { %p1767_p1 = scmp.eq.s32.totalorder %s1468_s8, 0  ;;  %p267_p3 = scmp.eq.s32.totalorder %s856_s9, 1 }
   0xa   : > { %p857_p5 = scmp.ge.s32.totalorder %s1380_s16, 1  ;;  %p274_p7 = scmp.lt.s32.totalorder %s1380_s16, 3 }
   0xb   : > { %p1477_p4 = por %p1767_p1, %p48_p0  ;;  %p1482_p6 = por %p267_p3, %p48_p0 }
   0xc   : > { %p1487_p8 = pnand %p857_p5, %p274_p7  ;;  %s1382_s20 = smov [#allocation5]  }
   0xd   : > { %s1773_s17 = scalar_select %p1477_p4, 1, 0 }
   0xe   : > { %s1774_s18 = scalar_select %p1482_p6, 1, 0 }
   0xf   : > { %s1776_s19 = scalar_select %p1487_p8, 1, 0 }
  0x10   : > { %1775 = sst [smem:[#allocation16_spill]] %s1774_s18  ;;  %s286_s21 = sshll.u32 %s1382_s20, 4  ;;  %s1491_s21 = int_to_ptr.vmem [resolvable:$true] %s286_s21 }
  0x11   : > { %p1122_p9 = pneg %p1487_p8  ;;  %s1383_s23 = smov [#allocation7]  }
  0x12   : > { %s305_s24 = sshll.u32 %s1383_s23, 4  ;;  %s1384_s25 = smov [#allocation8]   ;;  %s1502_s24 = int_to_ptr.vmem [resolvable:$true] %s305_s24 }
  0x13   : > { %p1498_p11 = pnand %p1122_p9, %p1767_p1  ;;  %s1504_s26 = sshll.u32 %s1384_s25, 4  ;;  %s325_s26 = int_to_ptr.vmem [resolvable:$true] %s1504_s26 }
  0x14   : > { %s1192_s29 = scalar_lea.hbm %s1757_s1, 2048 }
  0x15   : > { %p1193_p12 = scmp.ne.s32.totalorder %s1757_s1, %s1192_s29  ;;  %p1514_p13 = pneg %p1498_p11 }
  0x16   : > { %p1199_p5 = scmp.lt.u32.totalorder %s1192_s29, %s1757_s1 }
  0x17   : > { %p1195_p0 = pnand %p1514_p13, %p1193_p12 }
  0x19   : > { %p1196_p3 = pneg %p1195_p0 }
  0x1b   : > { %p1201_p7 = pnand %p1199_p5, %p1196_p3 }
  0x1d   : > { %1204 = shalt.err (!%p1201_p7)
}
  0x1e   : > { %s1205_s23 = scalar_lea.vmem %s1491_s21, 2048  ;;  %p1213_p2 = scmp.lt.s32.totalorder %s1491_s21, %s1491_s21 }
  0x1f   : > { %p1206_p9 = scmp.ne.s32.totalorder %s1491_s21, %s1205_s23  ;;  %p1214_p6 = scmp.lt.s32.totalorder %s1205_s23, %s1205_s23 }
  0x21   : > { %p1208_p10 = pnand %p1206_p9, %p1514_p13  ;;  %p1215_p12 = por %p1214_p6, %p1213_p2 }
  0x23   : > { %p1209_p1 = pneg %p1208_p10 }
  0x25   : > { %p1216_p0 = pnand %p1215_p12, %p1209_p1 }
  0x27   : > { %1219 = shalt.err (!%p1216_p0)
}
  0x28   : > { %s1385_s25 = smov 128   ;;  %s1386_s27 = smov 8  }
  0x29   : > { %1125 = dma.hbm_to_vmem [thread:$0]  (!%p1498_p11), %s1757_s1, 2048, %s1491_s21, [#allocation6], %s1385_s25, %s1385_s25, %s1386_s27  }
  0x2a   : > { %s1220_s9 = scalar_lea.hbm %s1760_s4, 2048 }
  0x2b   : > { %p1221_p1 = scmp.ne.s32.totalorder %s1760_s4, %s1220_s9  ;;  %p1227_p10 = scmp.lt.u32.totalorder %s1220_s9, %s1760_s4 }
  0x2d   : > { %p1223_p2 = pnand %p1221_p1, %p1514_p13 }
  0x2f   : > { %p1224_p6 = pneg %p1223_p2 }
  0x31   : > { %p1229_p3 = pnand %p1227_p10, %p1224_p6 }
  0x33   : > { %1232 = shalt.err (!%p1229_p3)
}
  0x34   : > { %s1233_s21 = scalar_lea.vmem %s1502_s24, 2048  ;;  %p1241_p12 = scmp.lt.s32.totalorder %s1502_s24, %s1502_s24 }
  0x35   : > { %p1234_p5 = scmp.ne.s32.totalorder %s1502_s24, %s1233_s21  ;;  %p1242_p0 = scmp.lt.s32.totalorder %s1233_s21, %s1233_s21 }
  0x37   : > { %p1236_p7 = pnand %p1234_p5, %p1514_p13  ;;  %p1243_p1 = por %p1242_p0, %p1241_p12 }
  0x39   : > { %p1237_p9 = pneg %p1236_p7 }
  0x3b   : > { %p1244_p2 = pnand %p1243_p1, %p1237_p9 }
  0x3d   : > { %1247 = shalt.err (!%p1244_p2)
}
  0x3e   : > { %1128 = dma.hbm_to_vmem [thread:$0]  (!%p1498_p11), %s1760_s4, 2048, %s1502_s24, [#allocation6], %s1385_s25, %s1385_s25, %s1386_s27  }
  0x3f   : > { %s1248_s30 = scalar_lea.hbm %s1763_s7, 2048 }
  0x40   : > { %p1249_p6 = scmp.ne.s32.totalorder %s1763_s7, %s1248_s30  ;;  %p1255_p5 = scmp.lt.u32.totalorder %s1248_s30, %s1763_s7 }
  0x42   : > { %p1251_p10 = pnand %p1249_p6, %p1514_p13 }
  0x44   : > { %p1252_p3 = pneg %p1251_p10 }
  0x46   : > { %p1257_p7 = pnand %p1255_p5, %p1252_p3 }
  0x48   : > { %1260 = shalt.err (!%p1257_p7)
}
  0x49   : > { %s1261_s21 = scalar_lea.vmem %s325_s26, 2048  ;;  %p1269_p1 = scmp.lt.s32.totalorder %s325_s26, %s325_s26 }
  0x4a   : > { %p1262_p9 = scmp.ne.s32.totalorder %s325_s26, %s1261_s21  ;;  %p1270_p2 = scmp.lt.s32.totalorder %s1261_s21, %s1261_s21 }
  0x4c   : > { %p1264_p12 = pnand %p1262_p9, %p1514_p13  ;;  %p1271_p4 = por %p1270_p2, %p1269_p1 }
  0x4e   : > { %p1265_p0 = pneg %p1264_p12 }
  0x50   : > { %p1272_p8 = pnand %p1271_p4, %p1265_p0 }
  0x52   : > { %1275 = shalt.err (!%p1272_p8)
}
  0x53   : > { %1131 = dma.hbm_to_vmem [thread:$0]  (!%p1498_p11), %s1763_s7, 2048, %s325_s26, [#allocation9], %s1385_s25, %s1385_s25, %s1386_s27  }
  0x54   : > { %s1587_s12 = sadd.s32 1, %s1380_s16   ;;  %s35_s18 = sadd.s32 1, %s1376_s15 }
  0x55   : > { %s32_s22 = ssub.s32 %s1380_s16, %s1587_s12  ;;  %p42_p8 = scmp.ne.s32.totalorder %s1376_s15, %s1372_s14 }
  0x56   : > { %p33_p4 = scmp.eq.s32.totalorder %s32_s22, 0  ;;  %p43_p13 = scmp.eq.s32.totalorder %s1380_s16, 0 }
  0x57   : > { %p1143_p6 = scmp.lt.s32.totalorder %s1380_s16, 2  ;;  %p1779_p3 = scmp.eq.s32.totalorder %s1468_s8, 1 }
  0x58   : > { %s1597_s28 = scalar_select %p33_p4, %s1376_s15, %s35_s18  }
  0x59   : > { %p44_p10 = por %p43_p13, %p42_p8  ;;  %p1601_p5 = por %p1779_p3, %p42_p8 }
  0x5a   : > { %s344_s30 = sand.u32 1, %s1376_s15   ;;  %s863_s11 = sshll.u32 %s1380_s16, 7 }
  0x5b   : > { %s862_s26 = sshll.u32 %s344_s30, 3  ;;  %s1610_s9 = scalar_lea.hbm %s1756_s0, %s863_s11 }
  0x5c   : > { %s348_s20 = scalar_lea.vmem [#allocation2], %s862_s26  ;;  %p1612_p11 = pnand %p1143_p6, %p44_p10 }
  0x5d   : > { %s355_s23 = sshll.u32 %s348_s20, 4  ;;  %s345_s24 = scalar_lea.sflag [#allocation3], %s344_s30  ;;  %s1616_s23 = int_to_ptr.vmem [resolvable:$true] %s355_s23 }
  0x5e   : > { %s1276_s13 = scalar_lea.hbm %s1610_s9, 128  ;;  %p1278_p9 = pneg %p1612_p11 }
  0x5f   : > { %p1277_p7 = scmp.ne.s32.totalorder %s1610_s9, %s1276_s13  ;;  %s1281_s11 = scalar_lea.hbm %s1756_s0, 256 }
  0x60   : > { %p1282_p1 = scmp.lt.u32.totalorder %s1610_s9, %s1756_s0  ;;  %p1283_p2 = scmp.lt.u32.totalorder %s1281_s11, %s1276_s13 }
  0x61   : > { %p1279_p12 = pnand %p1278_p9, %p1277_p7  ;;  %p1285_p8 = scmp.lt.u32.totalorder %s1276_s13, %s1610_s9 }
  0x62   : > { %p1284_p4 = por %p1283_p2, %p1282_p1 }
  0x63   : > { %p1280_p0 = pneg %p1279_p12 }
  0x64   : > { %p1286_p13 = por %p1285_p8, %p1284_p4 }
  0x66   : > { %p1287_p6 = pnand %p1286_p13, %p1280_p0 }
  0x68   : > { %1290 = shalt.err (!%p1287_p6)
}
  0x69   : > { %s1291_s30 = scalar_lea.vmem %s1616_s23, 128  ;;  %s1387_s27 = smov [#allocation2]  }
  0x6a   : > { %p1292_p10 = scmp.ne.s32.totalorder %s1616_s23, %s1291_s30  ;;  %s1296_s20 = sshll.u32 %s1387_s27, 4  ;;  %s1297_s20 = int_to_ptr.vmem [resolvable:$false] %s1296_s20 }
  0x6b   : > { %s1298_s22 = scalar_lea.vmem %s1297_s20, 256  ;;  %p1299_p12 = scmp.lt.s32.totalorder %s1616_s23, %s1297_s20 }
  0x6c   : > { %p1294_p3 = pnand %p1292_p10, %p1278_p9  ;;  %p1300_p1 = scmp.lt.s32.totalorder %s1298_s22, %s1291_s30 }
  0x6e   : > { %p1295_p7 = pneg %p1294_p3  ;;  %p1301_p2 = por %p1300_p1, %p1299_p12 }
  0x70   : > { %p1302_p4 = pnand %p1301_p2, %p1295_p7 }
  0x72   : > { %1305 = shalt.err (!%p1302_p4)
}
  0x73   : > { %1135 = dma.hbm_to_vmem [thread:$0]  (!%p1612_p11), %s1610_s9, 128, %s1616_s23, %s345_s24  }
  0x74   : > { %p1782_p0 = scmp.ne.s32.totalorder %s1776_s19, 0 }
  0x75   : > { %s1646_s13 = sand.u32 (!%p1782_p0), 1, %s1372_s14   ;;  %p1783_p9 = scmp.ne.s32.totalorder (!%p1782_p0), %s1773_s17, 0 }
  0x76   : > { %364 = sbr.rel (%p1782_p0) target bundleno = 1452 (0x5ac), region = 60  ;;  %s865_s18 = sshll.u32 (!%p1782_p0), %s1646_s13, 3 }
  0x77   : > { %s367_s11 = scalar_lea.sflag (!%p1782_p0), [#allocation3], %s1646_s13  ;;  %s1652_s26 = scalar_lea.vmem (!%p1782_p0), [#allocation2], %s865_s18 }
  0x7d   : > { %1351 = dma.done.wait (%p1783_p9), %s367_s11, 128  }
  0x7e   : > { %1353 = vsyncadd (%p1783_p9), %s367_s11, 4294967168  ;;  %p1784_p11 = scmp.eq.s32.totalorder %s1468_s8, 0 }
  0x80   : > { %1355 = dma.done.wait (%p1784_p11), [#allocation6], 4096   ;;  %p1785_p8 = pmov %p1784_p11 }
  0x82   : > { %1357 = vsyncadd (%p1785_p8), [#allocation6], 4294963200  ;;  %p1786_p13 = pmov %p1785_p8 }
  0x83   : > { %p1787_p6 = pmov %p1785_p8 }
  0x84   : > { %1359 = dma.done.wait (%p1786_p13), [#allocation9], 2048  }
  0x85   : > { %1361 = vsyncadd (%p1787_p6), [#allocation9], 4294965248  ;;  %v1388_v0 = vmov 0.0|0.0   ;;  %vm1389_vm0 = vmmov 0   ;;  %v1390_v1 = vmov 0.0   ;;  %v420_v2 = vld [vmem:[#allocation5] sm:$0xff] }
  0x86   : > { %1034 = vmatprep.subr.bf16.mxu0 %v1388_v0  ;;  %961 = vmatprep.mubr.msk.f32.mxu0 %vm1389_vm0, %v1390_v1  ;;  %v421_v3 = vld [vmem:[#allocation5 + $0x8] sm:$0xff]  ;;  %v422_v4 = vld [vmem:[#allocation5 + $0x10] sm:$0xff]  ;;  %v423_v6 = vld [vmem:[#allocation5 + $0x18] sm:$0xff]  ;;  %s418_s27 = scalar_lea.vmem [#allocation10], %s865_s18  ;;  %s875_s22 = sshll.u32 %s1468_s8, 7 }
  0x87   : > { %1058 = vmatprep.subr.bf16.mxu1 %v1388_v0  ;;  %996 = vmatprep.mubr.msk.f32.mxu1 %vm1389_vm0, %v1390_v1  ;;  %v1035_v5 = vpack.c.bf16 %v421_v3, %v420_v2  ;;  %v1038_v7 = vpack.c.bf16 %v423_v6, %v422_v4  ;;  %v424_v8 = vld [vmem:[#allocation5 + $0x20] sm:$0xff]  ;;  %v425_v9 = vld [vmem:[#allocation5 + $0x28] sm:$0xff]  ;;  %v426_v11 = vld [vmem:[#allocation5 + $0x30] sm:$0xff]  ;;  %s757_s20 = sshll.u32 %s418_s27, 4  ;;  %s1714_s17 = scalar_lea.hbm %s1766_s10, %s875_s22  ;;  %s1709_s20 = int_to_ptr.vmem [resolvable:$true] %s757_s20 }
  0x88   : > { %v1041_v10 = vpack.c.bf16 %v425_v9, %v424_v8  ;;  %v427_v12 = vld [vmem:[#allocation5 + $0x38] sm:$0xff]  ;;  %v428_v14 = vld [vmem:[#allocation5 + $0x40] sm:$0xff]  ;;  %v429_v15 = vld [vmem:[#allocation5 + $0x48] sm:$0xff]  ;;  %s744_s19 = scalar_lea.sflag [#allocation4], %s1646_s13  ;;  %s1306_s9 = scalar_lea.vmem %s1709_s20, 128 }
  0x89   : > { %1036 = vmatpush3.bf16.msra.mxu0 %v1035_v5  ;;  %v1044_v13 = vpack.c.bf16 %v427_v12, %v426_v11  ;;  %v1047_v16 = vpack.c.bf16 %v429_v15, %v428_v14  ;;  %v430_v17 = vld [vmem:[#allocation5 + $0x50] sm:$0xff]  ;;  %v431_v18 = vld [vmem:[#allocation5 + $0x58] sm:$0xff]  ;;  %v432_v20 = vld [vmem:[#allocation5 + $0x60] sm:$0xff]  ;;  %p1307_p10 = scmp.ne.s32.totalorder %s1709_s20, %s1306_s9  ;;  %s1391_s8 = smov [#allocation10]  }
  0x8a   : > { %1037 = vmatprep.subr.bf16.mxu0 %v1388_v0  ;;  %v1050_v19 = vpack.c.bf16 %v431_v18, %v430_v17  ;;  %v433_v21 = vld [vmem:[#allocation5 + $0x68] sm:$0xff]  ;;  %v434_v23 = vld [vmem:[#allocation5 + $0x70] sm:$0xff]  ;;  %v435_v24 = vld [vmem:[#allocation5 + $0x78] sm:$0xff]  ;;  %s1310_s18 = sshll.u32 %s1391_s8, 4  ;;  %s1311_s18 = int_to_ptr.vmem [resolvable:$false] %s1310_s18 }
  0x8b   : > { %v1053_v22 = vpack.c.bf16 %v433_v21, %v432_v20  ;;  %v1056_v25 = vpack.c.bf16 %v435_v24, %v434_v23  ;;  %v419_v26 = vld [vmem:[%s1652_s26] sm:$0xff]  ;;  %v538_v29 = vld [vmem:[#allocation7] sm:$0xff]  ;;  %v539_v30 = vld [vmem:[#allocation7 + $0x8] sm:$0xff]  ;;  %p1308_p3 = pnand %p1307_p10, %p1601_p5  ;;  %s1312_s23 = scalar_lea.vmem %s1311_s18, 256 }
  0x8c   : > { %v1059_v31 = vpack.c.bf16 %v539_v30, %v538_v29  ;;  %v540_v36 = vld [vmem:[#allocation7 + $0x10] sm:$0xff]  ;;  %v541_v37 = vld [vmem:[#allocation7 + $0x18] sm:$0xff]  ;;  %v542_v39 = vld [vmem:[#allocation7 + $0x20] sm:$0xff]  ;;  %p1313_p12 = scmp.lt.s32.totalorder %s1709_s20, %s1311_s18  ;;  %p1314_p1 = scmp.lt.s32.totalorder %s1312_s23, %s1306_s9 }
  0x8d   : > { %1039 = vmatpush3.bf16.msra.mxu0 %v1038_v7  ;;  %v1062_v38 = vpack.c.bf16 %v541_v37, %v540_v36  ;;  %v543_v40 = vld [vmem:[#allocation7 + $0x28] sm:$0xff]  ;;  %v544_v42 = vld [vmem:[#allocation7 + $0x30] sm:$0xff]  ;;  %v545_v43 = vld [vmem:[#allocation7 + $0x38] sm:$0xff]  ;;  %p1309_p7 = pneg %p1308_p3 }
  0x8e   : > { %1040 = vmatprep.subr.bf16.mxu0 %v1388_v0  ;;  %1060 = vmatpush3.bf16.msra.mxu1 %v1059_v31  ;;  %v1065_v41 = vpack.c.bf16 %v543_v40, %v542_v39  ;;  %v1068_v44 = vpack.c.bf16 %v545_v43, %v544_v42  ;;  %v546_v45 = vld [vmem:[#allocation7 + $0x40] sm:$0xff]  ;;  %v547_v46 = vld [vmem:[#allocation7 + $0x48] sm:$0xff]  ;;  %v548_v48 = vld [vmem:[#allocation7 + $0x50] sm:$0xff]  ;;  %p1315_p2 = por %p1314_p1, %p1313_p12 }
  0x8f   : > { %1061 = vmatprep.subr.bf16.mxu1 %v1388_v0  ;;  %v1071_v47 = vpack.c.bf16 %v547_v46, %v546_v45  ;;  %v549_v49 = vld [vmem:[#allocation7 + $0x58] sm:$0xff]  ;;  %v550_v51 = vld [vmem:[#allocation7 + $0x60] sm:$0xff]  ;;  %v551_v52 = vld [vmem:[#allocation7 + $0x68] sm:$0xff] }
  0x90   : > { %v1074_v50 = vpack.c.bf16 %v549_v49, %v548_v48  ;;  %v1077_v53 = vpack.c.bf16 %v551_v52, %v550_v51  ;;  %v552_v54 = vld [vmem:[#allocation7 + $0x70] sm:$0xff]  ;;  %v553_v55 = vld [vmem:[#allocation7 + $0x78] sm:$0xff]  ;;  %v657_v11 = vld [vmem:[#allocation8 + $0x8] sm:$0xff]  ;;  %p1316_p4 = pnand %p1315_p2, %p1309_p7 }
  0x91   : > { %1042 = vmatpush3.bf16.msra.mxu0 %v1041_v10  ;;  %v1080_v56 = vpack.c.bf16 %v553_v55, %v552_v54  ;;  %v870_v2 = vld [vmem:[%s1758_s2] ss:$0 sm:$0xff]  ;;  %v656_v10 = vld [vmem:[#allocation8] sm:$0xff]  ;;  %v659_v18 = vld [vmem:[#allocation8 + $0x18] sm:$0xff] }
  0x92   : > { %1043 = vmatprep.subr.bf16.mxu0 %v1388_v0  ;;  %1063 = vmatpush3.bf16.msra.mxu1 %v1062_v38  ;;  %v871_v4 = vld [vmem:[%s1759_s3] ss:$0 sm:$0xff]  ;;  %v1083_v12 = vpack.c.bf16 %v657_v11, %v656_v10  ;;  %v660_v20 = vld [vmem:[#allocation8 + $0x20] sm:$0xff]  ;;  %v661_v21 = vld [vmem:[#allocation8 + $0x28] sm:$0xff] }
  0x93   : > { %1064 = vmatprep.subr.bf16.mxu1 %v1388_v0  ;;  %v658_v17 = vld [vmem:[#allocation8 + $0x10] sm:$0xff]  ;;  %v663_v24 = vld [vmem:[#allocation8 + $0x38] sm:$0xff] }
  0x94   : > { %v662_v23 = vld [vmem:[#allocation8 + $0x30] sm:$0xff]  ;;  %v667_v30 = vld [vmem:[#allocation8 + $0x58] sm:$0xff] }
  0x95   : > { %1045 = vmatpush3.bf16.msra.mxu0 %v1044_v13  ;;  %v666_v29 = vld [vmem:[#allocation8 + $0x50] sm:$0xff]  ;;  %v671_v36 = vld [vmem:[#allocation8 + $0x78] sm:$0xff] }
  0x96   : > { %1046 = vmatprep.subr.bf16.mxu0 %v1388_v0  ;;  %1066 = vmatpush3.bf16.msra.mxu1 %v1065_v41  ;;  %v1098_v31 = vpack.c.bf16 %v667_v30, %v666_v29  ;;  %v872_v46 = vld [vmem:[%s1761_s5] ss:$0 sm:$0xff] }
  0x97   : > { %1067 = vmatprep.subr.bf16.mxu1 %v1388_v0 }
  0x99   : > { %1048 = vmatpush3.bf16.msra.mxu0 %v1047_v16 }
  0x9a   : > { %1049 = vmatprep.subr.bf16.mxu0 %v1388_v0  ;;  %1069 = vmatpush3.bf16.msra.mxu1 %v1068_v44 }
  0x9b   : > { %1070 = vmatprep.subr.bf16.mxu1 %v1388_v0 }
  0x9d   : > { %1051 = vmatpush3.bf16.msra.mxu0 %v1050_v19  ;;  %v1086_v19 = vpack.c.bf16 %v659_v18, %v658_v17 }
  0x9e   : > { %1052 = vmatprep.subr.bf16.mxu0 %v1388_v0  ;;  %1072 = vmatpush3.bf16.msra.mxu1 %v1071_v47 }
  0x9f   : > { %1073 = vmatprep.subr.bf16.mxu1 %v1388_v0 }
  0xa1   : > { %1054 = vmatpush3.bf16.msra.mxu0 %v1053_v22  ;;  %v1089_v22 = vpack.c.bf16 %v661_v21, %v660_v20 }
  0xa2   : > { %1055 = vmatprep.subr.bf16.mxu0 %v1388_v0  ;;  %1075 = vmatpush3.bf16.msra.mxu1 %v1074_v50 }
  0xa3   : > { %1076 = vmatprep.subr.bf16.mxu1 %v1388_v0 }
  0xa5   : > { %1057 = vmatpush3.bf16.msra.mxu0 %v1056_v25  ;;  %v1092_v25 = vpack.c.bf16 %v663_v24, %v662_v23 }
  0xa6   : > { %1082 = vmatprep.subr.bf16.mxu0 %v1388_v0  ;;  %1078 = vmatpush3.bf16.msra.mxu1 %v1077_v53 }
  0xa7   : > { %1079 = vmatprep.subr.bf16.mxu1 %v1388_v0 }
  0xa8   : > { %962 = vmatmul.mubr.f32.vlgmr.msra.gmra.mrb[0].mxu0 %v419_v26  ;;  %v664_v26 = vld [vmem:[#allocation8 + $0x40] sm:$0xff] }
  0xa9   : > { %1031 = vmatprep.mubr.msk.f32.mxu0 %vm1389_vm0, %v1390_v1  ;;  %1084 = vmatpush3.bf16.msra.mxu0 %v1083_v12 }
  0xaa   : > { %1081 = vmatpush3.bf16.msra.mxu1 %v1080_v56  ;;  %1085 = vmatprep.subr.bf16.mxu0 %v1388_v0 }
  0xad   : > { %1087 = vmatpush3.bf16.msra.mxu0 %v1086_v19 }
  0xae   : > { %1088 = vmatprep.subr.bf16.mxu0 %v1388_v0 }
  0xb1   : > { %1090 = vmatpush3.bf16.msra.mxu0 %v1089_v22 }
  0xb2   : > { %1091 = vmatprep.subr.bf16.mxu0 %v1388_v0 }
  0xb5   : > { %1093 = vmatpush3.bf16.msra.mxu0 %v1092_v25 }
  0xb6   : > { %1094 = vmatprep.subr.bf16.mxu0 %v1388_v0 }
 0x17b   : > { %v502_v27 = vpop.f32.mrb[0].mxu0 }
 0x17c   : > { %508 = vadd.xlane.f32.xlu0 %v502_v27  ;;  %v963_v28 = vpop.f32.mrb[1].mxu0 }
 0x209   : > { %v509_v32 = vpop.xlane.xlu0 %508 }
 0x20a   : > { %v510_v33 = vmul.f32 0.015625, %v509_v32  ;;  %v668_v32 = vld [vmem:[#allocation8 + $0x60] sm:$0xff] }
 0x20c   : > { %v511_v34 = vsub.f32 %v502_v27, %v510_v33  ;;  %v515_v57 = vmul.f32 %v510_v33, %v510_v33  ;;  %v665_v27 = vld [vmem:[#allocation8 + $0x48] sm:$0xff] }
 0x20d   : > { %v1095_v28 = vpack.c.bf16 %v665_v27, %v664_v26  ;;  %v669_v33 = vld [vmem:[#allocation8 + $0x68] sm:$0xff] }
 0x20e   : > { %v512_v35 = vmul.f32 %v511_v34, %v511_v34  ;;  %v516_v58 = vmul.f32 64.0, %v515_v57 }
 0x20f   : > { %1096 = vmatpush3.bf16.msra.mxu0 %v1095_v28 }
 0x210   : > { %513 = vadd.xlane.f32.xlu0 %v512_v35  ;;  %1097 = vmatprep.subr.bf16.mxu0 %v1388_v0  ;;  %v670_v35 = vld [vmem:[#allocation8 + $0x70] sm:$0xff] }
 0x211   : > { %v1104_v37 = vpack.c.bf16 %v671_v36, %v670_v35 }
 0x213   : > { %1099 = vmatpush3.bf16.msra.mxu0 %v1098_v31 }
 0x214   : > { %1100 = vmatprep.subr.bf16.mxu0 %v1388_v0 }
 0x29d   : > { %v514_v59 = vpop.xlane.xlu0 %513 }
 0x29e   : > { %v517_v60 = vsub.f32 %v514_v59, %v516_v58 }
 0x2a0   : > { %v518_v61 = vmul.f32 0.015625, %v517_v60 }
 0x2a2   : > { %v519_v62 = vmax.f32 %v518_v61, 0.0 }
 0x2a4   : > { %v520_v63 = vadd.f32 1e-05, %v519_v62 }
 0x2a6   : > { %1188 = vrsqrt.f32 %v520_v63 }
 0x2b0   : > { %v1189_v1 = vpop.eup %1188 }
 0x2b1   : > { %v522_v3 = vmul.f32 %v1189_v1, %v511_v34  ;;  %v1101_v34 = vpack.c.bf16 %v669_v33, %v668_v32 }
 0x2b3   : > { %v529_v5 = vmul.f32 %v870_v2, %v522_v3  ;;  %1102 = vmatpush3.bf16.msra.mxu0 %v1101_v34 }
 0x2b4   : > { %1103 = vmatprep.subr.bf16.mxu0 %v1388_v0  ;;  %v873_v0 = vld [vmem:[%s1762_s6] ss:$0 sm:$0xff] }
 0x2b5   : > { %v536_v6 = vadd.f32 %v871_v4, %v529_v5 }
 0x2b7   : > { %v537_v7 = vmax.f32 %v536_v6, 0.0  ;;  %1105 = vmatpush3.bf16.msra.mxu0 %v1104_v37 }
 0x2b9   : > { %997 = vmatmul.mubr.f32.vlgmr.msra.gmra.mrb[0].mxu1 %v537_v7 }
 0x38c   : > { %v620_v8 = vpop.f32.mrb[0].mxu1 }
 0x38d   : > { %626 = vadd.xlane.f32.xlu1 %v620_v8  ;;  %v998_v9 = vpop.f32.mrb[1].mxu1 }
 0x41a   : > { %v627_v13 = vpop.xlane.xlu1 %626 }
 0x41b   : > { %v628_v14 = vmul.f32 0.015625, %v627_v13 }
 0x41d   : > { %v629_v15 = vsub.f32 %v620_v8, %v628_v14  ;;  %v633_v38 = vmul.f32 %v628_v14, %v628_v14 }
 0x41f   : > { %v630_v16 = vmul.f32 %v629_v15, %v629_v15  ;;  %v634_v39 = vmul.f32 64.0, %v633_v38 }
 0x421   : > { %631 = vadd.xlane.f32.xlu1 %v630_v16 }
 0x4ae   : > { %v632_v40 = vpop.xlane.xlu1 %631 }
 0x4af   : > { %v635_v41 = vsub.f32 %v632_v40, %v634_v39 }
 0x4b1   : > { %v636_v42 = vmul.f32 0.015625, %v635_v41 }
 0x4b3   : > { %v637_v43 = vmax.f32 %v636_v42, 0.0 }
 0x4b5   : > { %v638_v44 = vadd.f32 1e-05, %v637_v43 }
 0x4b7   : > { %1190 = vrsqrt.f32 %v638_v44 }
 0x4c1   : > { %v1191_v45 = vpop.eup %1190 }
 0x4c2   : > { %v640_v47 = vmul.f32 %v1191_v45, %v629_v15 }
 0x4c4   : > { %v647_v48 = vmul.f32 %v872_v46, %v640_v47 }
 0x4c6   : > { %v654_v49 = vadd.f32 %v873_v0, %v647_v48 }
 0x4c8   : > { %v655_v50 = vmax.f32 %v654_v49, 0.0 }
 0x4ca   : > { %1032 = vmatmul.mubr.f32.vlgmr.msra.gmra.mrb[2].mxu0 %v655_v50 }
 0x59d   : > { %v738_v51 = vpop.f32.mrb[2].mxu0 }
 0x59e   : > { %742 = vst [vmem:[%s418_s27] sm:$0xff] %v738_v51  ;;  %v1033_v52 = vpop.f32.mrb[3].mxu0 }
 0x59f   : > { %1319 = shalt.err (!%p1316_p4)
}
 0x5a0   : > { %s1320_s13 = scalar_lea.hbm %s1714_s17, 128  ;;  %s1324_s25 = scalar_lea.hbm %s1766_s10, 256 }
 0x5a1   : > { %p1321_p0 = scmp.ne.s32.totalorder %s1714_s17, %s1320_s13  ;;  %p1325_p8 = scmp.lt.u32.totalorder %s1714_s17, %s1766_s10 }
 0x5a2   : > { %p1326_p13 = scmp.lt.u32.totalorder %s1324_s25, %s1320_s13  ;;  %p1328_p10 = scmp.lt.u32.totalorder %s1320_s13, %s1714_s17 }
 0x5a3   : > { %p1322_p9 = pnand %p1321_p0, %p1601_p5 }
 0x5a4   : > { %p1327_p6 = por %p1326_p13, %p1325_p8 }
 0x5a5   : > { %p1323_p11 = pneg %p1322_p9 }
 0x5a6   : > { %p1329_p3 = por %p1328_p10, %p1327_p6 }
 0x5a8   : > { %p1330_p7 = pnand %p1329_p3, %p1323_p11 }
 0x5aa   : > { %1333 = shalt.err (!%p1330_p7)
}
 0x5ab   : > { %1120 = dma.vmem_to_hbm [thread:$0]  (%p1601_p5), %s1709_s20, 128, %s1714_s17, %s744_s19  }
 0x5ac PF: > { %s1788_s22 = sld [smem:[#allocation15_spill]]  ;;  %s1789_s11 = sld [smem:[#allocation16_spill]] }
 0x5ad   : > { %p1791_p1 = scmp.ge.s32.totalorder %s1380_s16, 2 }
 0x5b2   : > { %s769_s26 = sand.u32 1, %s1788_s22   ;;  %p1790_p12 = scmp.ne.s32.totalorder %s1789_s11, 0 }
 0x5b3   : > { %s770_s9 = scalar_lea.sflag [#allocation4], %s769_s26 }
 0x5b4   : > { %p1137_p2 = pnand %p1791_p1, %p1790_p12 }
 0x5b6   : > { %1363 = dma.done.wait (!%p1137_p2), %s770_s9, 128  }
 0x5b7   : > { %1365 = vsyncadd (!%p1137_p2), %s770_s9, 4294967168  ;;  %p25_p4 = scmp.ge.s32.totalorder %s1587_s12, 4   ;;  %s1792_s13 = smov %s1372_s14 }
 0x5b8   : > { %s1793_s14 = smov %s1376_s15  ;;  %s1794_s15 = smov %s1597_s28 }
 0x5b9   : > { %s1795_s16 = smov %s1587_s12  ;;  %27 = sbr.rel (!%p25_p4) target bundleno = 7 (0x7), region = 117 }
 0x5c0   :  { %775 = vsyncpa [#allocation3], 1 }
 0x5c1   :  { %777 = vsyncpa [#allocation3 + $0x1], 1 }
 0x5c2   :  { %778 = vsyncpa [#allocation6], 1 }
 0x5c3   :  { %779 = vsyncpa [#allocation9], 1 }
 0x5c4   :  { %780 = vsyncpa [#allocation4], 1 }
 0x5c5   :  { %782 = vsyncpa [#allocation4 + $0x1], 1 }

</bundles_post_ra>
